<compile_context>
chip_gen: v7x
topology: tpu7x:2x2x1
jax: 0.10.0
libtpu: 0.0.40
codegen_flags: <defaults>
</compile_context>

<pallas_src>
import functools
import math

import jax
import jax.numpy as jnp
from jax.experimental import pallas as pl
from jax.experimental.pallas import tpu as pltpu


# ---------------------------------------------------------------------------
# helpers
# ---------------------------------------------------------------------------

def _round_up(x, m):
    return ((x + m - 1) // m) * m


def _pad_rows(a, rows):
    pr = rows - a.shape[0]
    return a if pr == 0 else jnp.pad(a, ((0, pr), (0, 0)))


def _pick_row_tile(m, target=512, mult=16):
    tm = min(target, _round_up(m, mult))
    return tm, _round_up(m, tm)


def _pick_col_tile(total, target):
    """Largest multiple of 128 <= target that divides `total` (total % 128 == 0)."""
    t = max(128, min(target, total))
    t = (t // 128) * 128
    while t > 128 and total % t:
        t -= 128
    return t if total % t == 0 else total


@functools.lru_cache(maxsize=1)
def _vmem_limit_bytes():
    # Leave headroom for double-buffered tiles + Mosaic scratch; on v7x
    # (64 MiB physical) this yields 48 MiB, on v5e/v6e (128 MiB) 96 MiB.
    cap = 64 << 20
    try:
        cap = int(pltpu.get_tpu_info().vmem_capacity_bytes)
    except Exception:
        pass
    return int(min(cap * 3 // 4, 96 << 20))


def _compiler_params(semantics):
    return pltpu.CompilerParams(
        dimension_semantics=semantics,
        vmem_limit_bytes=_vmem_limit_bytes(),
    )


# ---------------------------------------------------------------------------
# fused linear projection:  y = x @ W + b   (QKV / Q / KV projections)
# ---------------------------------------------------------------------------

def proj_kernel(x_ref, w_ref, b_ref, o_ref):
    acc = jnp.dot(x_ref[...], w_ref[...], preferred_element_type=jnp.float32)
    o_ref[...] = (acc + b_ref[...]).astype(o_ref.dtype)


def pallas_project(x2d, w, b, *, out_dtype=jnp.bfloat16, tile_m=512, tile_n=512):
    """x2d: (M, K) f32.  w: (K, N) bf16 pre-padded (N % 128 == 0).  b: (1, N) f32."""
    M, K = x2d.shape
    N = w.shape[1]
    tm, Mp = _pick_row_tile(M, tile_m)
    tn = _pick_col_tile(N, tile_n)
    xp = _pad_rows(x2d, Mp).astype(jnp.bfloat16)

    out = pl.pallas_call(
        proj_kernel,
        out_shape=jax.ShapeDtypeStruct((Mp, N), out_dtype),
        grid_spec=pltpu.PrefetchScalarGridSpec(
            num_scalar_prefetch=0,
            grid=(Mp // tm, N // tn),
            in_specs=[
                pl.BlockSpec((tm, K), lambda i, j: (i, 0)),
                pl.BlockSpec((K, tn), lambda i, j: (0, j)),
                pl.BlockSpec((1, tn), lambda i, j: (0, j)),
            ],
            out_specs=pl.BlockSpec((tm, tn), lambda i, j: (i, j)),
        ),
        compiler_params=_compiler_params(("parallel", "parallel")),
        cost_estimate=pl.CostEstimate(
            flops=2 * Mp * K * N, transcendentals=0,
            bytes_accessed=(Mp * K + K * N) * 2 + N * 4 + Mp * N * 2),
    )(xp, w, b)
    return out[:M]


# ---------------------------------------------------------------------------
# masked multi-head attention: one grid step per batch, all heads in-kernel
# ---------------------------------------------------------------------------

def attn_kernel(q_ref, k_ref, v_ref, m_ref, o_ref, *, n_heads, dk, scale):
    mask = m_ref[...]                      # (Sq or 1, Skv), 1.0 keep / 0.0 drop
    parts = []
    for h in range(n_heads):               # static unrolled loop over heads
        lo = h * dk
        qh = q_ref[:, lo:lo + dk]           # (Sq, dk)  bf16
        kh = k_ref[:, lo:lo + dk]           # (Skv, dk) bf16
        vh = v_ref[:, lo:lo + dk]           # (Skv, dk) bf16
        s = jax.lax.dot_general(qh, kh, (((1,), (1,)), ((), ())),
                                preferred_element_type=jnp.float32) * scale
        s = jnp.where(mask > 0, s, jnp.float32(-1e9))
        p = jnp.exp(s - jnp.max(s, axis=-1, keepdims=True))
        inv = pl.reciprocal(jnp.sum(p, axis=-1, keepdims=True), approx=True)
        ctx = jnp.dot(p.astype(jnp.bfloat16), vh,
                      preferred_element_type=jnp.float32)
        # TODO(synk): attention dropout is identity in eval mode.
        parts.append(ctx * inv)
    sq, d_out = o_ref.shape
    d_used = n_heads * dk
    if d_out > d_used:
        parts.append(jnp.zeros((sq, d_out - d_used), jnp.float32))
    # single lane-dense store of all heads: (Sq, Dp)
    o_ref[...] = jnp.concatenate(parts, axis=-1).astype(o_ref.dtype)


def pallas_attention(q_arr, kv_arr, mask, *, q_col, k_col, v_col,
                     n_heads, dk, dp):
    """q_arr: (B, Sq, nq*dp) bf16, kv_arr: (B, Skv, nkv*dp) bf16.

    q/k/v live at 128-padded column "slots" q_col/k_col/v_col of the packed
    projection outputs; BlockSpecs select them without any wrapper transpose.
    mask: (1 or B, 1 or Sq, Skv), nonzero = keep.
    """
    B, Sq, _ = q_arr.shape
    Skv = kv_arr.shape[1]
    mask = mask.astype(jnp.float32)
    if mask.ndim == 2:
        mask = mask[None]
    Bm, Sqm, _ = mask.shape
    mask_map = (lambda b: (b, 0, 0)) if Bm == B else (lambda b: (0, 0, 0))
    scale = 1.0 / math.sqrt(dk)

    kern = functools.partial(attn_kernel, n_heads=n_heads, dk=dk, scale=scale)
    return pl.pallas_call(
        kern,
        out_shape=jax.ShapeDtypeStruct((B, Sq, dp), jnp.bfloat16),
        grid_spec=pltpu.PrefetchScalarGridSpec(
            num_scalar_prefetch=0,
            grid=(B,),
            in_specs=[
                pl.BlockSpec((None, Sq, dp), lambda b: (b, 0, q_col)),
                pl.BlockSpec((None, Skv, dp), lambda b: (b, 0, k_col)),
                pl.BlockSpec((None, Skv, dp), lambda b: (b, 0, v_col)),
                pl.BlockSpec((None, Sqm, Skv), mask_map),
            ],
            out_specs=pl.BlockSpec((None, Sq, dp), lambda b: (b, 0, 0)),
        ),
        compiler_params=_compiler_params(("parallel",)),
    )(q_arr, kv_arr, kv_arr, mask)


# ---------------------------------------------------------------------------
# O-projection + residual add + LayerNorm (fused epilogue)
# ---------------------------------------------------------------------------

def oproj_add_ln_kernel(ctx_ref, w_ref, b_ref, res_ref, a_ref, bln_ref, o_ref,
                        *, eps):
    y = jnp.dot(ctx_ref[...], w_ref[...],
                preferred_element_type=jnp.float32) + b_ref[...]
    z = res_ref[...] + y
    d = z.shape[-1]
    mean = jnp.mean(z, axis=-1, keepdims=True)
    c = z - mean
    var = jnp.sum(c * c, axis=-1, keepdims=True) / (d - 1)   # torch unbiased std
    std = jnp.sqrt(var)
    o_ref[...] = (a_ref[...] * c / (std + eps) + bln_ref[...]).astype(o_ref.dtype)


def pallas_oproj_add_ln(ctx2d, wo, bo, res2d, a2, b2, *, eps=1e-6, tile_m=512):
    """ctx2d: (M, Cw) bf16, wo: (Cw, D) bf16, res2d: (M, D) f32 -> (M, D) f32."""
    M, Cw = ctx2d.shape
    D = wo.shape[1]
    tm, Mp = _pick_row_tile(M, tile_m)
    ctxp = _pad_rows(ctx2d, Mp)
    resp = _pad_rows(res2d, Mp)

    out = pl.pallas_call(
        functools.partial(oproj_add_ln_kernel, eps=eps),
        out_shape=jax.ShapeDtypeStruct((Mp, D), jnp.float32),
        grid_spec=pltpu.PrefetchScalarGridSpec(
            num_scalar_prefetch=0,
            grid=(Mp // tm,),
            in_specs=[
                pl.BlockSpec((tm, Cw), lambda i: (i, 0)),
                pl.BlockSpec((Cw, D), lambda i: (0, 0)),
                pl.BlockSpec((1, D), lambda i: (0, 0)),
                pl.BlockSpec((tm, D), lambda i: (i, 0)),
                pl.BlockSpec((1, D), lambda i: (0, 0)),
                pl.BlockSpec((1, D), lambda i: (0, 0)),
            ],
            out_specs=pl.BlockSpec((tm, D), lambda i: (i, 0)),
        ),
        compiler_params=_compiler_params(("parallel",)),
    )(ctxp, wo, bo, resp, a2, b2)
    return out[:M]


# ---------------------------------------------------------------------------
# position-wise FFN (d_ff tiled) + residual add + LayerNorm (fused epilogue)
# ---------------------------------------------------------------------------

def ffn_add_ln_kernel(x_ref, w1_ref, b1_ref, w2_ref, b2_ref, a_ref, bln_ref,
                      o_ref, acc_ref, *, eps):
    f = pl.program_id(1)

    @pl.when(f == 0)
    def _():
        acc_ref[...] = jnp.zeros_like(acc_ref)

    xb = x_ref[...].astype(jnp.bfloat16)
    h = jnp.dot(xb, w1_ref[...], preferred_element_type=jnp.float32) + b1_ref[...]
    h = jnp.maximum(h, 0.0)
    # TODO(synk): training-mode dropout would mask h here via pltpu.prng_*.
    acc_ref[...] += jnp.dot(h.astype(jnp.bfloat16), w2_ref[...],
                            preferred_element_type=jnp.float32)

    @pl.when(f == pl.num_programs(1) - 1)
    def _():
        z = x_ref[...] + (acc_ref[...] + b2_ref[...])
        d = z.shape[-1]
        mean = jnp.mean(z, axis=-1, keepdims=True)
        c = z - mean
        var = jnp.sum(c * c, axis=-1, keepdims=True) / (d - 1)
        std = jnp.sqrt(var)
        o_ref[...] = (a_ref[...] * c / (std + eps)
                      + bln_ref[...]).astype(o_ref.dtype)


def pallas_ffn_add_ln(x2d, w1, b1, w2, b2, a2, bln, *, eps=1e-6,
                      tile_m=512, tile_f=1024):
    """x2d: (M, D) f32; w1: (D, Fp) bf16; w2: (Fp, D) bf16 -> (M, D) f32."""
    M, D = x2d.shape
    Fp = w1.shape[1]
    tm, Mp = _pick_row_tile(M, tile_m)
    tf = _pick_col_tile(Fp, tile_f)
    xp = _pad_rows(x2d, Mp)

    out = pl.pallas_call(
        functools.partial(ffn_add_ln_kernel, eps=eps),
        out_shape=jax.ShapeDtypeStruct((Mp, D), jnp.float32),
        grid_spec=pltpu.PrefetchScalarGridSpec(
            num_scalar_prefetch=0,
            grid=(Mp // tm, Fp // tf),
            in_specs=[
                pl.BlockSpec((tm, D), lambda i, f: (i, 0)),
                pl.BlockSpec((D, tf), lambda i, f: (0, f)),
                pl.BlockSpec((1, tf), lambda i, f: (0, f)),
                pl.BlockSpec((tf, D), lambda i, f: (f, 0)),
                pl.BlockSpec((1, D), lambda i, f: (0, 0)),
                pl.BlockSpec((1, D), lambda i, f: (0, 0)),
                pl.BlockSpec((1, D), lambda i, f: (0, 0)),
            ],
            out_specs=pl.BlockSpec((tm, D), lambda i, f: (i, 0)),
            scratch_shapes=[pltpu.VMEM((tm, D), jnp.float32)],
        ),
        compiler_params=_compiler_params(("parallel", "arbitrary")),
        cost_estimate=pl.CostEstimate(
            flops=4 * Mp * D * Fp, transcendentals=0,
            bytes_accessed=Mp * D * 8 + (D * Fp + Fp * D) * 2 + Fp * 4 + D * 12),
    )(xp, w1, b1, w2, b2, a2, bln)
    return out[:M]


# ---------------------------------------------------------------------------
# one-time parameter preparation (padding + bf16 casting hoisted out of fwd)
# ---------------------------------------------------------------------------

def prepare_decoder_params(raw, n_heads):
    d_model = raw["ln"][0]["a"].shape[0]
    dk = d_model // n_heads
    dp = _round_up(d_model, 128)      # 128-padded "slot" width in packed outputs

    def slot_pack(ws, bs):
        n = len(ws)
        W = jnp.zeros((ws[0].shape[0], n * dp), jnp.float32)
        bb = jnp.zeros((1, n * dp), jnp.float32)
        for i, (w, b) in enumerate(zip(ws, bs)):
            W = W.at[:, i * dp:i * dp + w.shape[1]].set(w)
            bb = bb.at[:, i * dp:i * dp + b.shape[0]].set(b)
        return W.astype(jnp.bfloat16), bb

    def prep_attn(p):
        wqkv, bqkv = slot_pack([p["wq"], p["wk"], p["wv"]],
                               [p["bq"], p["bk"], p["bv"]])
        wq, bq = slot_pack([p["wq"]], [p["bq"]])
        wkv, bkv = slot_pack([p["wk"], p["wv"]], [p["bk"], p["bv"]])
        wo = jnp.zeros((dp, d_model), jnp.float32).at[:d_model].set(p["wo"])
        return dict(wqkv=wqkv, bqkv=bqkv, wq=wq, bq=bq, wkv=wkv, bkv=bkv,
                    wo=wo.astype(jnp.bfloat16),
                    bo=p["bo"].reshape(1, d_model).astype(jnp.float32))

    ffn = raw["ffn"]
    d_ff = ffn["w1"].shape[1]
    fp = _round_up(d_ff, 128)
    w1 = jnp.zeros((d_model, fp), jnp.float32).at[:, :d_ff].set(ffn["w1"])
    b1 = jnp.zeros((1, fp), jnp.float32).at[:, :d_ff].set(ffn["b1"])
    w2 = jnp.zeros((fp, d_model), jnp.float32).at[:d_ff].set(ffn["w2"])
    b2 = ffn["b2"].reshape(1, d_model).astype(jnp.float32)

    ln = [dict(a=l["a"].reshape(1, d_model).astype(jnp.float32),
               b=l["b"].reshape(1, d_model).astype(jnp.float32))
          for l in raw["ln"]]

    return dict(h=n_heads, dk=dk, d_model=d_model, dp=dp,
                self_attn=prep_attn(raw["self_attn"]),
                src_attn=prep_attn(raw["src_attn"]),
                ffn=dict(w1=w1.astype(jnp.bfloat16), b1=b1,
                         w2=w2.astype(jnp.bfloat16), b2=b2),
                ln=ln)


# ---------------------------------------------------------------------------
# DecoderLayer forward (eval mode: dropout = identity)
# ---------------------------------------------------------------------------

def decoder_layer(x, memory, src_mask, tgt_mask, prep):
    B, Sq, D = x.shape
    Sk = memory.shape[1]
    H, dk, dp = prep["h"], prep["dk"], prep["dp"]

    # --- sublayer 0: masked self-attention, residual + LN fused in O-proj ---
    sa = prep["self_attn"]
    qkv = pallas_project(x.reshape(B * Sq, D), sa["wqkv"], sa["bqkv"])
    qkv = qkv.reshape(B, Sq, 3 * dp)
    ctx = pallas_attention(qkv, qkv, tgt_mask, q_col=0, k_col=1, v_col=2,
                           n_heads=H, dk=dk, dp=dp)
    x = pallas_oproj_add_ln(ctx.reshape(B * Sq, dp), sa["wo"], sa["bo"],
                            x.reshape(B * Sq, D),
                            prep["ln"][0]["a"], prep["ln"][0]["b"]
                            ).reshape(B, Sq, D)

    # --- sublayer 1: source attention, residual + LN fused in O-proj --------
    ca = prep["src_attn"]
    q = pallas_project(x.reshape(B * Sq, D), ca["wq"], ca["bq"]
                       ).reshape(B, Sq, dp)
    kv = pallas_project(memory.reshape(B * Sk, D), ca["wkv"], ca["bkv"]
                        ).reshape(B, Sk, 2 * dp)
    ctx = pallas_attention(q, kv, src_mask, q_col=0, k_col=0, v_col=1,
                           n_heads=H, dk=dk, dp=dp)
    x = pallas_oproj_add_ln(ctx.reshape(B * Sq, dp), ca["wo"], ca["bo"],
                            x.reshape(B * Sq, D),
                            prep["ln"][1]["a"], prep["ln"][1]["b"]
                            ).reshape(B, Sq, D)

    # --- sublayer 2: position-wise FFN, residual + LN fused ------------------
    f = prep["ffn"]
    x = pallas_ffn_add_ln(x.reshape(B * Sq, D), f["w1"], f["b1"],
                          f["w2"], f["b2"],
                          prep["ln"][2]["a"], prep["ln"][2]["b"]
                          ).reshape(B, Sq, D)
    return x


# ---------------------------------------------------------------------------
# pure-JAX reference (same bf16-input / f32-accumulate precision choices)
# ---------------------------------------------------------------------------

def _ref_linear(x, w, b):
    y = jnp.einsum("...k,kn->...n", x.astype(jnp.bfloat16),
                   w.astype(jnp.bfloat16), preferred_element_type=jnp.float32)
    return y + b


def _ref_mha(q_in, k_in, v_in, mask, p):
    B, Sq, D = q_in.shape
    Sk = k_in.shape[1]
    H = p["h"]
    dk = D // H

    def split(x, w, b):
        return _ref_linear(x, w, b).reshape(B, -1, H, dk).transpose(0, 2, 1, 3)

    q = split(q_in, p["wq"], p["bq"])
    k = split(k_in, p["wk"], p["bk"])
    v = split(v_in, p["wv"], p["bv"])
    scores = jnp.einsum("bhqd,bhkd->bhqk", q.astype(jnp.bfloat16),
                        k.astype(jnp.bfloat16),
                        preferred_element_type=jnp.float32) / math.sqrt(dk)
    m4 = jnp.broadcast_to(mask, (B, Sq, Sk))[:, None]
    scores = jnp.where(m4 > 0, scores, -1e9)
    attn = jax.nn.softmax(scores, axis=-1)
    ctx = jnp.einsum("bhqk,bhkd->bhqd", attn.astype(jnp.bfloat16),
                     v.astype(jnp.bfloat16), preferred_element_type=jnp.float32)
    ctx = ctx.transpose(0, 2, 1, 3).reshape(B, Sq, D)
    return _ref_linear(ctx, p["wo"], p["bo"])


def _ref_ffn(x, w1, b1, w2, b2):
    h = jnp.maximum(_ref_linear(x, w1, b1), 0.0)
    return jnp.einsum("...f,fd->...d", h.astype(jnp.bfloat16),
                      w2.astype(jnp.bfloat16),
                      preferred_element_type=jnp.float32) + b2


def _ref_add_ln(x, y, a2, b2, eps=1e-6):
    z = x + y
    mean = jnp.mean(z, axis=-1, keepdims=True)
    c = z - mean
    var = jnp.sum(c * c, axis=-1, keepdims=True) / (z.shape[-1] - 1)
    return a2 * c / (jnp.sqrt(var) + eps) + b2


def _ref_decoder_layer(x, memory, src_mask, tgt_mask, params):
    a = _ref_mha(x, x, x, tgt_mask, params["self_attn"])
    x = _ref_add_ln(x, a, params["ln"][0]["a"], params["ln"][0]["b"])
    a = _ref_mha(x, memory, memory, src_mask, params["src_attn"])
    x = _ref_add_ln(x, a, params["ln"][1]["a"], params["ln"][1]["b"])
    f = _ref_ffn(x, params["ffn"]["w1"], params["ffn"]["b1"],
                 params["ffn"]["w2"], params["ffn"]["b2"])
    return _ref_add_ln(x, f, params["ln"][2]["a"], params["ln"][2]["b"])


# ---------------------------------------------------------------------------
# main
# ---------------------------------------------------------------------------

if __name__ == "__main__":
    batch, tgt_len, src_len = 2, 8, 16
    d_model, n_heads, d_ff = 32, 4, 64

    key = jax.random.PRNGKey(0)
    keys = list(jax.random.split(key, 32))
    kit = iter(keys)

    def linear_params(k, fan_in, fan_out):
        kw, kb = jax.random.split(k)
        lim = 1.0 / math.sqrt(fan_in)
        w = jax.random.uniform(kw, (fan_in, fan_out), jnp.float32, -lim, lim)
        b = jax.random.uniform(kb, (fan_out,), jnp.float32, -lim, lim)
        return w, b

    def attn_params():
        wq, bq = linear_params(next(kit), d_model, d_model)
        wk, bk = linear_params(next(kit), d_model, d_model)
        wv, bv = linear_params(next(kit), d_model, d_model)
        wo, bo = linear_params(next(kit), d_model, d_model)
        return dict(h=n_heads, wq=wq, bq=bq, wk=wk, bk=bk,
                    wv=wv, bv=bv, wo=wo, bo=bo)

    w1, b1 = linear_params(next(kit), d_model, d_ff)
    w2, b2 = linear_params(next(kit), d_ff, d_model)

    ln_params = []
    for _ in range(3):
        ln_params.append(dict(
            a=1.0 + 0.1 * jax.random.normal(next(kit), (d_model,), jnp.float32),
            b=0.1 * jax.random.normal(next(kit), (d_model,), jnp.float32)))

    params = dict(self_attn=attn_params(), src_attn=attn_params(),
                  ffn=dict(w1=w1, b1=b1, w2=w2, b2=b2), ln=ln_params)

    x = jax.random.normal(next(kit), (batch, tgt_len, d_model), jnp.float32)
    memory = jax.random.normal(next(kit), (batch, src_len, d_model), jnp.float32)

    # tgt mask: causal (1, Sq, Sq); src mask: (B, 1, Sk) with padding masked.
    tgt_mask = jnp.tril(jnp.ones((1, tgt_len, tgt_len), jnp.float32))
    src_valid = jnp.array([src_len, src_len - 3])
    src_mask = (jnp.arange(src_len)[None, None, :]
                < src_valid[:, None, None]).astype(jnp.float32)

    prep = prepare_decoder_params(params, n_heads)
    fwd = jax.jit(lambda xx, mm, sm, tm_: decoder_layer(xx, mm, sm, tm_, prep))

    out = fwd(x, memory, src_mask, tgt_mask)
    out = jax.block_until_ready(out)

    ref = _ref_decoder_layer(x, memory, src_mask, tgt_mask, params)
    assert out.shape == (batch, tgt_len, d_model)
    max_err = float(jnp.max(jnp.abs(out - ref)))
    assert jnp.allclose(out, ref, atol=2e-2, rtol=2e-2), \
        f"mismatch vs reference, max abs err = {max_err}"

    print("KERNEL_OK")
</pallas_src>

<mosaic_0001>
module attributes {stable_mosaic.version = 11 : i64} {
  func.func @proj_kernel(%arg0: i32, %arg1: i32, %arg2: memref<16x32xbf16, #tpu.memory_space<vmem>>, %arg3: memref<32x384xbf16, #tpu.memory_space<vmem>>, %arg4: memref<1x384xf32, #tpu.memory_space<vmem>>, %arg5: memref<16x384xbf16, #tpu.memory_space<vmem>>) attributes {dimension_semantics = [#tpu.dimension_semantics<parallel>, #tpu.dimension_semantics<parallel>], iteration_bounds = array<i64: 1, 1>, scalar_prefetch = 0 : i64, scratch_operands = 0 : i64, tpu.core_type = #tpu.core_type<tc>, window_params = [{transform_indices = @transform_0, window_bounds = array<i64: 16, 32>}, {transform_indices = @transform_1, window_bounds = array<i64: 32, 384>}, {transform_indices = @transform_2, window_bounds = array<i64: 1, 384>}, {transform_indices = @transform_3, window_bounds = array<i64: 16, 384>}]} {
    %c0 = arith.constant 0 : index
    %c0_0 = arith.constant 0 : index
    %0 = vector.load %arg2[%c0, %c0_0] : memref<16x32xbf16, #tpu.memory_space<vmem>>, vector<16x32xbf16>
    %c0_1 = arith.constant 0 : index
    %c0_2 = arith.constant 0 : index
    %1 = vector.load %arg3[%c0_1, %c0_2] : memref<32x384xbf16, #tpu.memory_space<vmem>>, vector<32x384xbf16>
    %cst = arith.constant dense<0.000000e+00> : vector<16x384xf32>
    %2 = tpu.matmul %0, %1, %cst {dimension_numbers = #tpu.dot_dimension_numbers<[1], [0], [0], [1], [0, 0, 1, 1], [], []>} : vector<16x32xbf16>, vector<32x384xbf16>, vector<16x384xf32> -> vector<16x384xf32>
    %c0_3 = arith.constant 0 : index
    %c0_4 = arith.constant 0 : index
    %3 = vector.load %arg4[%c0_3, %c0_4] : memref<1x384xf32, #tpu.memory_space<vmem>>, vector<1x384xf32>
    %4 = vector.broadcast %3 : vector<1x384xf32> to vector<16x384xf32>
    %5 = arith.addf %2, %4 : vector<16x384xf32>
    %6 = arith.truncf %5 : vector<16x384xf32> to vector<16x384xbf16>
    %c0_5 = arith.constant 0 : index
    %c0_6 = arith.constant 0 : index
    %7 = vector.load %arg5[%c0_5, %c0_6] : memref<16x384xbf16, #tpu.memory_space<vmem>>, vector<16x384xbf16>
    tpu.vector_store %arg5[%c0_5, %c0_6], %6 {strides = array<i32>} : memref<16x384xbf16, #tpu.memory_space<vmem>>, vector<16x384xbf16>,
    return
  }
  func.func @transform_0(%arg0: i32, %arg1: i32) -> (i32, i32) {
    %c0_i32 = arith.constant 0 : i32
    %c0_i32_0 = arith.constant 0 : i32
    return %arg0, %c0_i32 : i32, i32
  }
  func.func @transform_1(%arg0: i32, %arg1: i32) -> (i32, i32) {
    %c0_i32 = arith.constant 0 : i32
    %c0_i32_0 = arith.constant 0 : i32
    return %c0_i32, %arg1 : i32, i32
  }
  func.func @transform_2(%arg0: i32, %arg1: i32) -> (i32, i32) {
    %c0_i32 = arith.constant 0 : i32
    %c0_i32_0 = arith.constant 0 : i32
    return %c0_i32, %arg1 : i32, i32
  }
  func.func @transform_3(%arg0: i32, %arg1: i32) -> (i32, i32) {
    %c0_i32 = arith.constant 0 : i32
    return %arg0, %arg1 : i32, i32
  }
}

module attributes {stable_mosaic.version = 11 : i64} {
  func.func @attn_kernel(%arg0: i32, %arg1: memref<1x8x128xbf16, #tpu.memory_space<vmem>>, %arg2: memref<1x8x128xbf16, #tpu.memory_space<vmem>>, %arg3: memref<1x8x128xbf16, #tpu.memory_space<vmem>>, %arg4: memref<1x8x8xf32, #tpu.memory_space<vmem>>, %arg5: memref<1x8x128xbf16, #tpu.memory_space<vmem>>) attributes {dimension_semantics = [#tpu.dimension_semantics<parallel>], iteration_bounds = array<i64: 2>, scalar_prefetch = 0 : i64, scratch_operands = 0 : i64, tpu.core_type = #tpu.core_type<tc>, window_params = [{transform_indices = @transform_0, window_bounds = array<i64: 1, 8, 128>}, {transform_indices = @transform_1, window_bounds = array<i64: 1, 8, 128>}, {transform_indices = @transform_2, window_bounds = array<i64: 1, 8, 128>}, {pipeline_mode = #tpu.pipeline_mode<synchronous>, transform_indices = @transform_3, window_bounds = array<i64: 1, 8, 8>}, {transform_indices = @transform_4, window_bounds = array<i64: 1, 8, 128>}]} {
    %c0 = arith.constant 0 : index
    %c0_0 = arith.constant 0 : index
    %c0_1 = arith.constant 0 : index
    %0 = vector.load %arg4[%c0, %c0_0, %c0_1] : memref<1x8x8xf32, #tpu.memory_space<vmem>>, vector<1x8x8xf32>
    %1 = vector.shape_cast %0 : vector<1x8x8xf32> to vector<8x8xf32>
    %c0_2 = arith.constant 0 : index
    %c0_3 = arith.constant 0 : index
    %c0_4 = arith.constant 0 : index
    %2 = vector.load %arg1[%c0_2, %c0_3, %c0_4] : memref<1x8x128xbf16, #tpu.memory_space<vmem>>, vector<1x8x8xbf16>
    %3 = vector.shape_cast %2 : vector<1x8x8xbf16> to vector<8x8xbf16>
    %c0_5 = arith.constant 0 : index
    %c0_6 = arith.constant 0 : index
    %c0_7 = arith.constant 0 : index
    %4 = vector.load %arg2[%c0_5, %c0_6, %c0_7] : memref<1x8x128xbf16, #tpu.memory_space<vmem>>, vector<1x8x8xbf16>
    %5 = vector.shape_cast %4 : vector<1x8x8xbf16> to vector<8x8xbf16>
    %c0_8 = arith.constant 0 : index
    %c0_9 = arith.constant 0 : index
    %c0_10 = arith.constant 0 : index
    %6 = vector.load %arg3[%c0_8, %c0_9, %c0_10] : memref<1x8x128xbf16, #tpu.memory_space<vmem>>, vector<1x8x8xbf16>
    %7 = vector.shape_cast %6 : vector<1x8x8xbf16> to vector<8x8xbf16>
    %cst = arith.constant dense<0.000000e+00> : vector<8x8xf32>
    %8 = tpu.matmul %3, %5, %cst {dimension_numbers = #tpu.dot_dimension_numbers<[1], [1], [0], [0], [0, 0, 1, 0], [], []>} : vector<8x8xbf16>, vector<8x8xbf16>, vector<8x8xf32> -> vector<8x8xf32>
    %cst_11 = arith.constant 0.353553385 : f32
    %9 = vector.broadcast %cst_11 : f32 to vector<8x8xf32>
    %10 = arith.mulf %8, %9 : vector<8x8xf32>
    %cst_12 = arith.constant 0.000000e+00 : f32
    %11 = vector.broadcast %cst_12 : f32 to vector<8x8xf32>
    %12 = arith.cmpf ogt, %1, %11 : vector<8x8xf32>
    %cst_13 = arith.constant -1.000000e+09 : f32
    %13 = vector.broadcast %cst_13 : f32 to vector<8x8xf32>
    %14 = arith.select %12, %10, %13 : vector<8x8xi1>, vector<8x8xf32>
    %cst_14 = arith.constant dense<0xFF800000> : vector<8xf32>
    %15 = vector.multi_reduction <maximumf>, %14, %cst_14 [1] : vector<8x8xf32> to vector<8xf32>
    %16 = vector.shape_cast %15 : vector<8xf32> to vector<8x1xf32>
    %17 = vector.broadcast %16 : vector<8x1xf32> to vector<8x8xf32>
    %18 = arith.subf %14, %17 : vector<8x8xf32>
    %19 = math.exp %18 : vector<8x8xf32>
    %cst_15 = arith.constant dense<0.000000e+00> : vector<8xf32>
    %20 = vector.multi_reduction <add>, %19, %cst_15 [1] : vector<8x8xf32> to vector<8xf32>
    %21 = vector.shape_cast %20 : vector<8xf32> to vector<8x1xf32>
    %22 = tpu.reciprocal %21 {approx = true} : vector<8x1xf32> -> vector<8x1xf32>
    %23 = arith.truncf %19 : vector<8x8xf32> to vector<8x8xbf16>
    %cst_16 = arith.constant dense<0.000000e+00> : vector<8x8xf32>
    %24 = tpu.matmul %23, %7, %cst_16 {dimension_numbers = #tpu.dot_dimension_numbers<[1], [0], [0], [1], [0, 0, 1, 1], [], []>} : vector<8x8xbf16>, vector<8x8xbf16>, vector<8x8xf32> -> vector<8x8xf32>
    %25 = vector.broadcast %22 : vector<8x1xf32> to vector<8x8xf32>
    %26 = arith.mulf %24, %25 : vector<8x8xf32>
    %c0_17 = arith.constant 0 : index
    %c0_18 = arith.constant 0 : index
    %c8 = arith.constant 8 : index
    %27 = vector.load %arg1[%c0_17, %c0_18, %c8] : memref<1x8x128xbf16, #tpu.memory_space<vmem>>, vector<1x8x8xbf16>
    %28 = vector.shape_cast %27 : vector<1x8x8xbf16> to vector<8x8xbf16>
    %c0_19 = arith.constant 0 : index
    %c0_20 = arith.constant 0 : index
    %c8_21 = arith.constant 8 : index
    %29 = vector.load %arg2[%c0_19, %c0_20, %c8_21] : memref<1x8x128xbf16, #tpu.memory_space<vmem>>, vector<1x8x8xbf16>
    %30 = vector.shape_cast %29 : vector<1x8x8xbf16> to vector<8x8xbf16>
    %c0_22 = arith.constant 0 : index
    %c0_23 = arith.constant 0 : index
    %c8_24 = arith.constant 8 : index
    %31 = vector.load %arg3[%c0_22, %c0_23, %c8_24] : memref<1x8x128xbf16, #tpu.memory_space<vmem>>, vector<1x8x8xbf16>
    %32 = vector.shape_cast %31 : vector<1x8x8xbf16> to vector<8x8xbf16>
    %cst_25 = arith.constant dense<0.000000e+00> : vector<8x8xf32>
    %33 = tpu.matmul %28, %30, %cst_25 {dimension_numbers = #tpu.dot_dimension_numbers<[1], [1], [0], [0], [0, 0, 1, 0], [], []>} : vector<8x8xbf16>, vector<8x8xbf16>, vector<8x8xf32> -> vector<8x8xf32>
    %cst_26 = arith.constant 0.353553385 : f32
    %34 = vector.broadcast %cst_26 : f32 to vector<8x8xf32>
    %35 = arith.mulf %33, %34 : vector<8x8xf32>
    %cst_27 = arith.constant 0.000000e+00 : f32
    %36 = vector.broadcast %cst_27 : f32 to vector<8x8xf32>
    %37 = arith.cmpf ogt, %1, %36 : vector<8x8xf32>
    %cst_28 = arith.constant -1.000000e+09 : f32
    %38 = vector.broadcast %cst_28 : f32 to vector<8x8xf32>
    %39 = arith.select %37, %35, %38 : vector<8x8xi1>, vector<8x8xf32>
    %cst_29 = arith.constant dense<0xFF800000> : vector<8xf32>
    %40 = vector.multi_reduction <maximumf>, %39, %cst_29 [1] : vector<8x8xf32> to vector<8xf32>
    %41 = vector.shape_cast %40 : vector<8xf32> to vector<8x1xf32>
    %42 = vector.broadcast %41 : vector<8x1xf32> to vector<8x8xf32>
    %43 = arith.subf %39, %42 : vector<8x8xf32>
    %44 = math.exp %43 : vector<8x8xf32>
    %cst_30 = arith.constant dense<0.000000e+00> : vector<8xf32>
    %45 = vector.multi_reduction <add>, %44, %cst_30 [1] : vector<8x8xf32> to vector<8xf32>
    %46 = vector.shape_cast %45 : vector<8xf32> to vector<8x1xf32>
    %47 = tpu.reciprocal %46 {approx = true} : vector<8x1xf32> -> vector<8x1xf32>
    %48 = arith.truncf %44 : vector<8x8xf32> to vector<8x8xbf16>
    %cst_31 = arith.constant dense<0.000000e+00> : vector<8x8xf32>
    %49 = tpu.matmul %48, %32, %cst_31 {dimension_numbers = #tpu.dot_dimension_numbers<[1], [0], [0], [1], [0, 0, 1, 1], [], []>} : vector<8x8xbf16>, vector<8x8xbf16>, vector<8x8xf32> -> vector<8x8xf32>
    %50 = vector.broadcast %47 : vector<8x1xf32> to vector<8x8xf32>
    %51 = arith.mulf %49, %50 : vector<8x8xf32>
    %c0_32 = arith.constant 0 : index
    %c0_33 = arith.constant 0 : index
    %c16 = arith.constant 16 : index
    %52 = vector.load %arg1[%c0_32, %c0_33, %c16] : memref<1x8x128xbf16, #tpu.memory_space<vmem>>, vector<1x8x8xbf16>
    %53 = vector.shape_cast %52 : vector<1x8x8xbf16> to vector<8x8xbf16>
    %c0_34 = arith.constant 0 : index
    %c0_35 = arith.constant 0 : index
    %c16_36 = arith.constant 16 : index
    %54 = vector.load %arg2[%c0_34, %c0_35, %c16_36] : memref<1x8x128xbf16, #tpu.memory_space<vmem>>, vector<1x8x8xbf16>
    %55 = vector.shape_cast %54 : vector<1x8x8xbf16> to vector<8x8xbf16>
    %c0_37 = arith.constant 0 : index
    %c0_38 = arith.constant 0 : index
    %c16_39 = arith.constant 16 : index
    %56 = vector.load %arg3[%c0_37, %c0_38, %c16_39] : memref<1x8x128xbf16, #tpu.memory_space<vmem>>, vector<1x8x8xbf16>
    %57 = vector.shape_cast %56 : vector<1x8x8xbf16> to vector<8x8xbf16>
    %cst_40 = arith.constant dense<0.000000e+00> : vector<8x8xf32>
    %58 = tpu.matmul %53, %55, %cst_40 {dimension_numbers = #tpu.dot_dimension_numbers<[1], [1], [0], [0], [0, 0, 1, 0], [], []>} : vector<8x8xbf16>, vector<8x8xbf16>, vector<8x8xf32> -> vector<8x8xf32>
    %cst_41 = arith.constant 0.353553385 : f32
    %59 = vector.broadcast %cst_41 : f32 to vector<8x8xf32>
    %60 = arith.mulf %58, %59 : vector<8x8xf32>
    %cst_42 = arith.constant 0.000000e+00 : f32
    %61 = vector.broadcast %cst_42 : f32 to vector<8x8xf32>
    %62 = arith.cmpf ogt, %1, %61 : vector<8x8xf32>
    %cst_43 = arith.constant -1.000000e+09 : f32
    %63 = vector.broadcast %cst_43 : f32 to vector<8x8xf32>
    %64 = arith.select %62, %60, %63 : vector<8x8xi1>, vector<8x8xf32>
    %cst_44 = arith.constant dense<0xFF800000> : vector<8xf32>
    %65 = vector.multi_reduction <maximumf>, %64, %cst_44 [1] : vector<8x8xf32> to vector<8xf32>
    %66 = vector.shape_cast %65 : vector<8xf32> to vector<8x1xf32>
    %67 = vector.broadcast %66 : vector<8x1xf32> to vector<8x8xf32>
    %68 = arith.subf %64, %67 : vector<8x8xf32>
    %69 = math.exp %68 : vector<8x8xf32>
    %cst_45 = arith.constant dense<0.000000e+00> : vector<8xf32>
    %70 = vector.multi_reduction <add>, %69, %cst_45 [1] : vector<8x8xf32> to vector<8xf32>
    %71 = vector.shape_cast %70 : vector<8xf32> to vector<8x1xf32>
    %72 = tpu.reciprocal %71 {approx = true} : vector<8x1xf32> -> vector<8x1xf32>
    %73 = arith.truncf %69 : vector<8x8xf32> to vector<8x8xbf16>
    %cst_46 = arith.constant dense<0.000000e+00> : vector<8x8xf32>
    %74 = tpu.matmul %73, %57, %cst_46 {dimension_numbers = #tpu.dot_dimension_numbers<[1], [0], [0], [1], [0, 0, 1, 1], [], []>} : vector<8x8xbf16>, vector<8x8xbf16>, vector<8x8xf32> -> vector<8x8xf32>
    %75 = vector.broadcast %72 : vector<8x1xf32> to vector<8x8xf32>
    %76 = arith.mulf %74, %75 : vector<8x8xf32>
    %c0_47 = arith.constant 0 : index
    %c0_48 = arith.constant 0 : index
    %c24 = arith.constant 24 : index
    %77 = vector.load %arg1[%c0_47, %c0_48, %c24] : memref<1x8x128xbf16, #tpu.memory_space<vmem>>, vector<1x8x8xbf16>
    %78 = vector.shape_cast %77 : vector<1x8x8xbf16> to vector<8x8xbf16>
    %c0_49 = arith.constant 0 : index
    %c0_50 = arith.constant 0 : index
    %c24_51 = arith.constant 24 : index
    %79 = vector.load %arg2[%c0_49, %c0_50, %c24_51] : memref<1x8x128xbf16, #tpu.memory_space<vmem>>, vector<1x8x8xbf16>
    %80 = vector.shape_cast %79 : vector<1x8x8xbf16> to vector<8x8xbf16>
    %c0_52 = arith.constant 0 : index
    %c0_53 = arith.constant 0 : index
    %c24_54 = arith.constant 24 : index
    %81 = vector.load %arg3[%c0_52, %c0_53, %c24_54] : memref<1x8x128xbf16, #tpu.memory_space<vmem>>, vector<1x8x8xbf16>
    %82 = vector.shape_cast %81 : vector<1x8x8xbf16> to vector<8x8xbf16>
    %cst_55 = arith.constant dense<0.000000e+00> : vector<8x8xf32>
    %83 = tpu.matmul %78, %80, %cst_55 {dimension_numbers = #tpu.dot_dimension_numbers<[1], [1], [0], [0], [0, 0, 1, 0], [], []>} : vector<8x8xbf16>, vector<8x8xbf16>, vector<8x8xf32> -> vector<8x8xf32>
    %cst_56 = arith.constant 0.353553385 : f32
    %84 = vector.broadcast %cst_56 : f32 to vector<8x8xf32>
    %85 = arith.mulf %83, %84 : vector<8x8xf32>
    %cst_57 = arith.constant 0.000000e+00 : f32
    %86 = vector.broadcast %cst_57 : f32 to vector<8x8xf32>
    %87 = arith.cmpf ogt, %1, %86 : vector<8x8xf32>
    %cst_58 = arith.constant -1.000000e+09 : f32
    %88 = vector.broadcast %cst_58 : f32 to vector<8x8xf32>
    %89 = arith.select %87, %85, %88 : vector<8x8xi1>, vector<8x8xf32>
    %cst_59 = arith.constant dense<0xFF800000> : vector<8xf32>
    %90 = vector.multi_reduction <maximumf>, %89, %cst_59 [1] : vector<8x8xf32> to vector<8xf32>
    %91 = vector.shape_cast %90 : vector<8xf32> to vector<8x1xf32>
    %92 = vector.broadcast %91 : vector<8x1xf32> to vector<8x8xf32>
    %93 = arith.subf %89, %92 : vector<8x8xf32>
    %94 = math.exp %93 : vector<8x8xf32>
    %cst_60 = arith.constant dense<0.000000e+00> : vector<8xf32>
    %95 = vector.multi_reduction <add>, %94, %cst_60 [1] : vector<8x8xf32> to vector<8xf32>
    %96 = vector.shape_cast %95 : vector<8xf32> to vector<8x1xf32>
    %97 = tpu.reciprocal %96 {approx = true} : vector<8x1xf32> -> vector<8x1xf32>
    %98 = arith.truncf %94 : vector<8x8xf32> to vector<8x8xbf16>
    %cst_61 = arith.constant dense<0.000000e+00> : vector<8x8xf32>
    %99 = tpu.matmul %98, %82, %cst_61 {dimension_numbers = #tpu.dot_dimension_numbers<[1], [0], [0], [1], [0, 0, 1, 1], [], []>} : vector<8x8xbf16>, vector<8x8xbf16>, vector<8x8xf32> -> vector<8x8xf32>
    %100 = vector.broadcast %97 : vector<8x1xf32> to vector<8x8xf32>
    %101 = arith.mulf %99, %100 : vector<8x8xf32>
    %cst_62 = arith.constant 0.000000e+00 : f32
    %102 = vector.broadcast %cst_62 : f32 to vector<8x96xf32>
    %103 = tpu.concatenate %26, %51, %76, %101, %102 in 1 : vector<8x8xf32>, vector<8x8xf32>, vector<8x8xf32>, vector<8x8xf32>, vector<8x96xf32> -> vector<8x128xf32>
    %104 = arith.truncf %103 : vector<8x128xf32> to vector<8x128xbf16>
    %c0_63 = arith.constant 0 : index
    %c0_64 = arith.constant 0 : index
    %c0_65 = arith.constant 0 : index
    %105 = vector.load %arg5[%c0_63, %c0_64, %c0_65] : memref<1x8x128xbf16, #tpu.memory_space<vmem>>, vector<1x8x128xbf16>
    %106 = vector.shape_cast %105 : vector<1x8x128xbf16> to vector<8x128xbf16>
    %107 = vector.shape_cast %104 : vector<8x128xbf16> to vector<1x8x128xbf16>
    tpu.vector_store %arg5[%c0_63, %c0_64, %c0_65], %107 {strides = array<i32>} : memref<1x8x128xbf16, #tpu.memory_space<vmem>>, vector<1x8x128xbf16>,
    return
  }
  func.func @transform_0(%arg0: i32) -> (i32, i32, i32) {
    %c0_i32 = arith.constant 0 : i32
    %c0_i32_0 = arith.constant 0 : i32
    %c0_i32_1 = arith.constant 0 : i32
    return %arg0, %c0_i32, %c0_i32_0 : i32, i32, i32
  }
  func.func @transform_1(%arg0: i32) -> (i32, i32, i32) {
    %c0_i32 = arith.constant 0 : i32
    %c1_i32 = arith.constant 1 : i32
    %c0_i32_0 = arith.constant 0 : i32
    return %arg0, %c0_i32, %c1_i32 : i32, i32, i32
  }
  func.func @transform_2(%arg0: i32) -> (i32, i32, i32) {
    %c0_i32 = arith.constant 0 : i32
    %c2_i32 = arith.constant 2 : i32
    %c0_i32_0 = arith.constant 0 : i32
    return %arg0, %c0_i32, %c2_i32 : i32, i32, i32
  }
  func.func @transform_3(%arg0: i32) -> (i32, i32, i32) {
    %c0_i32 = arith.constant 0 : i32
    %c0_i32_0 = arith.constant 0 : i32
    %c0_i32_1 = arith.constant 0 : i32
    %c0_i32_2 = arith.constant 0 : i32
    return %c0_i32, %c0_i32_0, %c0_i32_1 : i32, i32, i32
  }
  func.func @transform_4(%arg0: i32) -> (i32, i32, i32) {
    %c0_i32 = arith.constant 0 : i32
    %c0_i32_0 = arith.constant 0 : i32
    %c0_i32_1 = arith.constant 0 : i32
    return %arg0, %c0_i32, %c0_i32_0 : i32, i32, i32
  }
}

module attributes {stable_mosaic.version = 11 : i64} {
  func.func @oproj_add_ln_kernel(%arg0: i32, %arg1: memref<16x128xbf16, #tpu.memory_space<vmem>>, %arg2: memref<128x32xbf16, #tpu.memory_space<vmem>>, %arg3: memref<1x32xf32, #tpu.memory_space<vmem>>, %arg4: memref<16x32xf32, #tpu.memory_space<vmem>>, %arg5: memref<1x32xf32, #tpu.memory_space<vmem>>, %arg6: memref<1x32xf32, #tpu.memory_space<vmem>>, %arg7: memref<16x32xf32, #tpu.memory_space<vmem>>) attributes {dimension_semantics = [#tpu.dimension_semantics<parallel>], iteration_bounds = array<i64: 1>, scalar_prefetch = 0 : i64, scratch_operands = 0 : i64, tpu.core_type = #tpu.core_type<tc>, window_params = [{transform_indices = @transform_0, window_bounds = array<i64: 16, 128>}, {pipeline_mode = #tpu.pipeline_mode<synchronous>, transform_indices = @transform_1, window_bounds = array<i64: 128, 32>}, {pipeline_mode = #tpu.pipeline_mode<synchronous>, transform_indices = @transform_2, window_bounds = array<i64: 1, 32>}, {transform_indices = @transform_3, window_bounds = array<i64: 16, 32>}, {pipeline_mode = #tpu.pipeline_mode<synchronous>, transform_indices = @transform_4, window_bounds = array<i64: 1, 32>}, {pipeline_mode = #tpu.pipeline_mode<synchronous>, transform_indices = @transform_5, window_bounds = array<i64: 1, 32>}, {transform_indices = @transform_6, window_bounds = array<i64: 16, 32>}]} {
    %c0 = arith.constant 0 : index
    %c0_0 = arith.constant 0 : index
    %0 = vector.load %arg1[%c0, %c0_0] : memref<16x128xbf16, #tpu.memory_space<vmem>>, vector<16x128xbf16>
    %c0_1 = arith.constant 0 : index
    %c0_2 = arith.constant 0 : index
    %1 = vector.load %arg2[%c0_1, %c0_2] : memref<128x32xbf16, #tpu.memory_space<vmem>>, vector<128x32xbf16>
    %cst = arith.constant dense<0.000000e+00> : vector<16x32xf32>
    %2 = tpu.matmul %0, %1, %cst {dimension_numbers = #tpu.dot_dimension_numbers<[1], [0], [0], [1], [0, 0, 1, 1], [], []>} : vector<16x128xbf16>, vector<128x32xbf16>, vector<16x32xf32> -> vector<16x32xf32>
    %c0_3 = arith.constant 0 : index
    %c0_4 = arith.constant 0 : index
    %3 = vector.load %arg3[%c0_3, %c0_4] : memref<1x32xf32, #tpu.memory_space<vmem>>, vector<1x32xf32>
    %4 = vector.broadcast %3 : vector<1x32xf32> to vector<16x32xf32>
    %5 = arith.addf %2, %4 : vector<16x32xf32>
    %c0_5 = arith.constant 0 : index
    %c0_6 = arith.constant 0 : index
    %6 = vector.load %arg4[%c0_5, %c0_6] : memref<16x32xf32, #tpu.memory_space<vmem>>, vector<16x32xf32>
    %7 = arith.addf %6, %5 : vector<16x32xf32>
    %cst_7 = arith.constant dense<0.000000e+00> : vector<16xf32>
    %8 = vector.multi_reduction <add>, %7, %cst_7 [1] : vector<16x32xf32> to vector<16xf32>
    %9 = vector.shape_cast %8 : vector<16xf32> to vector<16x1xf32>
    %cst_8 = arith.constant 3.200000e+01 : f32
    %10 = vector.broadcast %cst_8 : f32 to vector<16x1xf32>
    %11 = arith.divf %9, %10 : vector<16x1xf32>
    %12 = vector.broadcast %11 : vector<16x1xf32> to vector<16x32xf32>
    %13 = arith.subf %7, %12 : vector<16x32xf32>
    %14 = arith.mulf %13, %13 : vector<16x32xf32>
    %cst_9 = arith.constant dense<0.000000e+00> : vector<16xf32>
    %15 = vector.multi_reduction <add>, %14, %cst_9 [1] : vector<16x32xf32> to vector<16xf32>
    %16 = vector.shape_cast %15 : vector<16xf32> to vector<16x1xf32>
    %cst_10 = arith.constant 3.100000e+01 : f32
    %17 = vector.broadcast %cst_10 : f32 to vector<16x1xf32>
    %18 = arith.divf %16, %17 : vector<16x1xf32>
    %19 = math.sqrt %18 : vector<16x1xf32>
    %c0_11 = arith.constant 0 : index
    %c0_12 = arith.constant 0 : index
    %20 = vector.load %arg5[%c0_11, %c0_12] : memref<1x32xf32, #tpu.memory_space<vmem>>, vector<1x32xf32>
    %21 = vector.broadcast %20 : vector<1x32xf32> to vector<16x32xf32>
    %22 = arith.mulf %21, %13 : vector<16x32xf32>
    %cst_13 = arith.constant 9.99999997E-7 : f32
    %23 = vector.broadcast %cst_13 : f32 to vector<16x1xf32>
    %24 = arith.addf %19, %23 : vector<16x1xf32>
    %25 = vector.broadcast %24 : vector<16x1xf32> to vector<16x32xf32>
    %26 = arith.divf %22, %25 : vector<16x32xf32>
    %c0_14 = arith.constant 0 : index
    %c0_15 = arith.constant 0 : index
    %27 = vector.load %arg6[%c0_14, %c0_15] : memref<1x32xf32, #tpu.memory_space<vmem>>, vector<1x32xf32>
    %28 = vector.broadcast %27 : vector<1x32xf32> to vector<16x32xf32>
    %29 = arith.addf %26, %28 : vector<16x32xf32>
    %c0_16 = arith.constant 0 : index
    %c0_17 = arith.constant 0 : index
    %30 = vector.load %arg7[%c0_16, %c0_17] : memref<16x32xf32, #tpu.memory_space<vmem>>, vector<16x32xf32>
    tpu.vector_store %arg7[%c0_16, %c0_17], %29 {strides = array<i32>} : memref<16x32xf32, #tpu.memory_space<vmem>>, vector<16x32xf32>,
    return
  }
  func.func @transform_0(%arg0: i32) -> (i32, i32) {
    %c0_i32 = arith.constant 0 : i32
    %c0_i32_0 = arith.constant 0 : i32
    return %arg0, %c0_i32 : i32, i32
  }
  func.func @transform_1(%arg0: i32) -> (i32, i32) {
    %c0_i32 = arith.constant 0 : i32
    %c0_i32_0 = arith.constant 0 : i32
    %c0_i32_1 = arith.constant 0 : i32
    return %c0_i32, %c0_i32_0 : i32, i32
  }
  func.func @transform_2(%arg0: i32) -> (i32, i32) {
    %c0_i32 = arith.constant 0 : i32
    %c0_i32_0 = arith.constant 0 : i32
    %c0_i32_1 = arith.constant 0 : i32
    return %c0_i32, %c0_i32_0 : i32, i32
  }
  func.func @transform_3(%arg0: i32) -> (i32, i32) {
    %c0_i32 = arith.constant 0 : i32
    %c0_i32_0 = arith.constant 0 : i32
    return %arg0, %c0_i32 : i32, i32
  }
  func.func @transform_4(%arg0: i32) -> (i32, i32) {
    %c0_i32 = arith.constant 0 : i32
    %c0_i32_0 = arith.constant 0 : i32
    %c0_i32_1 = arith.constant 0 : i32
    return %c0_i32, %c0_i32_0 : i32, i32
  }
  func.func @transform_5(%arg0: i32) -> (i32, i32) {
    %c0_i32 = arith.constant 0 : i32
    %c0_i32_0 = arith.constant 0 : i32
    %c0_i32_1 = arith.constant 0 : i32
    return %c0_i32, %c0_i32_0 : i32, i32
  }
  func.func @transform_6(%arg0: i32) -> (i32, i32) {
    %c0_i32 = arith.constant 0 : i32
    %c0_i32_0 = arith.constant 0 : i32
    return %arg0, %c0_i32 : i32, i32
  }
}

module attributes {stable_mosaic.version = 11 : i64} {
  func.func @proj_kernel(%arg0: i32, %arg1: i32, %arg2: memref<16x32xbf16, #tpu.memory_space<vmem>>, %arg3: memref<32x128xbf16, #tpu.memory_space<vmem>>, %arg4: memref<1x128xf32, #tpu.memory_space<vmem>>, %arg5: memref<16x128xbf16, #tpu.memory_space<vmem>>) attributes {dimension_semantics = [#tpu.dimension_semantics<parallel>, #tpu.dimension_semantics<parallel>], iteration_bounds = array<i64: 1, 1>, scalar_prefetch = 0 : i64, scratch_operands = 0 : i64, tpu.core_type = #tpu.core_type<tc>, window_params = [{transform_indices = @transform_0, window_bounds = array<i64: 16, 32>}, {transform_indices = @transform_1, window_bounds = array<i64: 32, 128>}, {transform_indices = @transform_2, window_bounds = array<i64: 1, 128>}, {transform_indices = @transform_3, window_bounds = array<i64: 16, 128>}]} {
    %c0 = arith.constant 0 : index
    %c0_0 = arith.constant 0 : index
    %0 = vector.load %arg2[%c0, %c0_0] : memref<16x32xbf16, #tpu.memory_space<vmem>>, vector<16x32xbf16>
    %c0_1 = arith.constant 0 : index
    %c0_2 = arith.constant 0 : index
    %1 = vector.load %arg3[%c0_1, %c0_2] : memref<32x128xbf16, #tpu.memory_space<vmem>>, vector<32x128xbf16>
    %cst = arith.constant dense<0.000000e+00> : vector<16x128xf32>
    %2 = tpu.matmul %0, %1, %cst {dimension_numbers = #tpu.dot_dimension_numbers<[1], [0], [0], [1], [0, 0, 1, 1], [], []>} : vector<16x32xbf16>, vector<32x128xbf16>, vector<16x128xf32> -> vector<16x128xf32>
    %c0_3 = arith.constant 0 : index
    %c0_4 = arith.constant 0 : index
    %3 = vector.load %arg4[%c0_3, %c0_4] : memref<1x128xf32, #tpu.memory_space<vmem>>, vector<1x128xf32>
    %4 = vector.broadcast %3 : vector<1x128xf32> to vector<16x128xf32>
    %5 = arith.addf %2, %4 : vector<16x128xf32>
    %6 = arith.truncf %5 : vector<16x128xf32> to vector<16x128xbf16>
    %c0_5 = arith.constant 0 : index
    %c0_6 = arith.constant 0 : index
    %7 = vector.load %arg5[%c0_5, %c0_6] : memref<16x128xbf16, #tpu.memory_space<vmem>>, vector<16x128xbf16>
    tpu.vector_store %arg5[%c0_5, %c0_6], %6 {strides = array<i32>} : memref<16x128xbf16, #tpu.memory_space<vmem>>, vector<16x128xbf16>,
    return
  }
  func.func @transform_0(%arg0: i32, %arg1: i32) -> (i32, i32) {
    %c0_i32 = arith.constant 0 : i32
    %c0_i32_0 = arith.constant 0 : i32
    return %arg0, %c0_i32 : i32, i32
  }
  func.func @transform_1(%arg0: i32, %arg1: i32) -> (i32, i32) {
    %c0_i32 = arith.constant 0 : i32
    %c0_i32_0 = arith.constant 0 : i32
    return %c0_i32, %arg1 : i32, i32
  }
  func.func @transform_2(%arg0: i32, %arg1: i32) -> (i32, i32) {
    %c0_i32 = arith.constant 0 : i32
    %c0_i32_0 = arith.constant 0 : i32
    return %c0_i32, %arg1 : i32, i32
  }
  func.func @transform_3(%arg0: i32, %arg1: i32) -> (i32, i32) {
    %c0_i32 = arith.constant 0 : i32
    return %arg0, %arg1 : i32, i32
  }
}

module attributes {stable_mosaic.version = 11 : i64} {
  func.func @proj_kernel(%arg0: i32, %arg1: i32, %arg2: memref<32x32xbf16, #tpu.memory_space<vmem>>, %arg3: memref<32x256xbf16, #tpu.memory_space<vmem>>, %arg4: memref<1x256xf32, #tpu.memory_space<vmem>>, %arg5: memref<32x256xbf16, #tpu.memory_space<vmem>>) attributes {dimension_semantics = [#tpu.dimension_semantics<parallel>, #tpu.dimension_semantics<parallel>], iteration_bounds = array<i64: 1, 1>, scalar_prefetch = 0 : i64, scratch_operands = 0 : i64, tpu.core_type = #tpu.core_type<tc>, window_params = [{transform_indices = @transform_0, window_bounds = array<i64: 32, 32>}, {transform_indices = @transform_1, window_bounds = array<i64: 32, 256>}, {transform_indices = @transform_2, window_bounds = array<i64: 1, 256>}, {transform_indices = @transform_3, window_bounds = array<i64: 32, 256>}]} {
    %c0 = arith.constant 0 : index
    %c0_0 = arith.constant 0 : index
    %0 = vector.load %arg2[%c0, %c0_0] : memref<32x32xbf16, #tpu.memory_space<vmem>>, vector<32x32xbf16>
    %c0_1 = arith.constant 0 : index
    %c0_2 = arith.constant 0 : index
    %1 = vector.load %arg3[%c0_1, %c0_2] : memref<32x256xbf16, #tpu.memory_space<vmem>>, vector<32x256xbf16>
    %cst = arith.constant dense<0.000000e+00> : vector<32x256xf32>
    %2 = tpu.matmul %0, %1, %cst {dimension_numbers = #tpu.dot_dimension_numbers<[1], [0], [0], [1], [0, 0, 1, 1], [], []>} : vector<32x32xbf16>, vector<32x256xbf16>, vector<32x256xf32> -> vector<32x256xf32>
    %c0_3 = arith.constant 0 : index
    %c0_4 = arith.constant 0 : index
    %3 = vector.load %arg4[%c0_3, %c0_4] : memref<1x256xf32, #tpu.memory_space<vmem>>, vector<1x256xf32>
    %4 = vector.broadcast %3 : vector<1x256xf32> to vector<32x256xf32>
    %5 = arith.addf %2, %4 : vector<32x256xf32>
    %6 = arith.truncf %5 : vector<32x256xf32> to vector<32x256xbf16>
    %c0_5 = arith.constant 0 : index
    %c0_6 = arith.constant 0 : index
    %7 = vector.load %arg5[%c0_5, %c0_6] : memref<32x256xbf16, #tpu.memory_space<vmem>>, vector<32x256xbf16>
    tpu.vector_store %arg5[%c0_5, %c0_6], %6 {strides = array<i32>} : memref<32x256xbf16, #tpu.memory_space<vmem>>, vector<32x256xbf16>,
    return
  }
  func.func @transform_0(%arg0: i32, %arg1: i32) -> (i32, i32) {
    %c0_i32 = arith.constant 0 : i32
    %c0_i32_0 = arith.constant 0 : i32
    return %arg0, %c0_i32 : i32, i32
  }
  func.func @transform_1(%arg0: i32, %arg1: i32) -> (i32, i32) {
    %c0_i32 = arith.constant 0 : i32
    %c0_i32_0 = arith.constant 0 : i32
    return %c0_i32, %arg1 : i32, i32
  }
  func.func @transform_2(%arg0: i32, %arg1: i32) -> (i32, i32) {
    %c0_i32 = arith.constant 0 : i32
    %c0_i32_0 = arith.constant 0 : i32
    return %c0_i32, %arg1 : i32, i32
  }
  func.func @transform_3(%arg0: i32, %arg1: i32) -> (i32, i32) {
    %c0_i32 = arith.constant 0 : i32
    return %arg0, %arg1 : i32, i32
  }
}

module attributes {stable_mosaic.version = 11 : i64} {
  func.func @ffn_add_ln_kernel(%arg0: i32, %arg1: i32, %arg2: memref<16x32xf32, #tpu.memory_space<vmem>>, %arg3: memref<32x128xbf16, #tpu.memory_space<vmem>>, %arg4: memref<1x128xf32, #tpu.memory_space<vmem>>, %arg5: memref<128x32xbf16, #tpu.memory_space<vmem>>, %arg6: memref<1x32xf32, #tpu.memory_space<vmem>>, %arg7: memref<1x32xf32, #tpu.memory_space<vmem>>, %arg8: memref<1x32xf32, #tpu.memory_space<vmem>>, %arg9: memref<16x32xf32, #tpu.memory_space<vmem>>, %arg10: memref<16x32xf32, #tpu.memory_space<vmem>>) attributes {dimension_semantics = [#tpu.dimension_semantics<parallel>, #tpu.dimension_semantics<arbitrary>], iteration_bounds = array<i64: 1, 1>, scalar_prefetch = 0 : i64, scratch_operands = 1 : i64, tpu.core_type = #tpu.core_type<tc>, window_params = [{transform_indices = @transform_0, window_bounds = array<i64: 16, 32>}, {transform_indices = @transform_1, window_bounds = array<i64: 32, 128>}, {transform_indices = @transform_2, window_bounds = array<i64: 1, 128>}, {transform_indices = @transform_3, window_bounds = array<i64: 128, 32>}, {pipeline_mode = #tpu.pipeline_mode<synchronous>, transform_indices = @transform_4, window_bounds = array<i64: 1, 32>}, {pipeline_mode = #tpu.pipeline_mode<synchronous>, transform_indices = @transform_5, window_bounds = array<i64: 1, 32>}, {pipeline_mode = #tpu.pipeline_mode<synchronous>, transform_indices = @transform_6, window_bounds = array<i64: 1, 32>}, {transform_indices = @transform_7, window_bounds = array<i64: 16, 32>}]} {
    %c0_i32 = arith.constant 0 : i32
    %0 = arith.cmpi eq, %arg1, %c0_i32 : i32
    %1 = arith.extui %0 : i1 to i32
    %c0_i32_0 = arith.constant 0 : i32
    %2 = arith.cmpi ne, %1, %c0_i32_0 : i32
    scf.if %2 {
      %cst_16 = arith.constant 0.000000e+00 : f32
      %21 = vector.broadcast %cst_16 : f32 to vector<16x32xf32>
      %c0_17 = arith.constant 0 : index
      %c0_18 = arith.constant 0 : index
      %22 = vector.load %arg10[%c0_17, %c0_18] : memref<16x32xf32, #tpu.memory_space<vmem>>, vector<16x32xf32>
      tpu.vector_store %arg10[%c0_17, %c0_18], %21 {strides = array<i32>} : memref<16x32xf32, #tpu.memory_space<vmem>>, vector<16x32xf32>,
    } else {
    }
    %c0 = arith.constant 0 : index
    %c0_1 = arith.constant 0 : index
    %3 = vector.load %arg2[%c0, %c0_1] : memref<16x32xf32, #tpu.memory_space<vmem>>, vector<16x32xf32>
    %4 = arith.truncf %3 : vector<16x32xf32> to vector<16x32xbf16>
    %c0_2 = arith.constant 0 : index
    %c0_3 = arith.constant 0 : index
    %5 = vector.load %arg3[%c0_2, %c0_3] : memref<32x128xbf16, #tpu.memory_space<vmem>>, vector<32x128xbf16>
    %cst = arith.constant dense<0.000000e+00> : vector<16x128xf32>
    %6 = tpu.matmul %4, %5, %cst {dimension_numbers = #tpu.dot_dimension_numbers<[1], [0], [0], [1], [0, 0, 1, 1], [], []>} : vector<16x32xbf16>, vector<32x128xbf16>, vector<16x128xf32> -> vector<16x128xf32>
    %c0_4 = arith.constant 0 : index
    %c0_5 = arith.constant 0 : index
    %7 = vector.load %arg4[%c0_4, %c0_5] : memref<1x128xf32, #tpu.memory_space<vmem>>, vector<1x128xf32>
    %8 = vector.broadcast %7 : vector<1x128xf32> to vector<16x128xf32>
    %9 = arith.addf %6, %8 : vector<16x128xf32>
    %cst_6 = arith.constant 0.000000e+00 : f32
    %10 = vector.broadcast %cst_6 : f32 to vector<16x128xf32>
    %11 = arith.maximumf %9, %10 : vector<16x128xf32>
    %c0_7 = arith.constant 0 : index
    %c0_8 = arith.constant 0 : index
    %12 = vector.load %arg10[%c0_7, %c0_8] : memref<16x32xf32, #tpu.memory_space<vmem>>, vector<16x32xf32>
    %13 = arith.truncf %11 : vector<16x128xf32> to vector<16x128xbf16>
    %c0_9 = arith.constant 0 : index
    %c0_10 = arith.constant 0 : index
    %14 = vector.load %arg5[%c0_9, %c0_10] : memref<128x32xbf16, #tpu.memory_space<vmem>>, vector<128x32xbf16>
    %cst_11 = arith.constant dense<0.000000e+00> : vector<16x32xf32>
    %15 = tpu.matmul %13, %14, %cst_11 {dimension_numbers = #tpu.dot_dimension_numbers<[1], [0], [0], [1], [0, 0, 1, 1], [], []>} : vector<16x128xbf16>, vector<128x32xbf16>, vector<16x32xf32> -> vector<16x32xf32>
    %16 = arith.addf %12, %15 : vector<16x32xf32>
    %c0_12 = arith.constant 0 : index
    %c0_13 = arith.constant 0 : index
    %17 = vector.load %arg10[%c0_12, %c0_13] : memref<16x32xf32, #tpu.memory_space<vmem>>, vector<16x32xf32>
    tpu.vector_store %arg10[%c0_12, %c0_13], %16 {strides = array<i32>} : memref<16x32xf32, #tpu.memory_space<vmem>>, vector<16x32xf32>,
    %c0_i32_14 = arith.constant 0 : i32
    %18 = arith.cmpi eq, %arg1, %c0_i32_14 : i32
    %19 = arith.extui %18 : i1 to i32
    %c0_i32_15 = arith.constant 0 : i32
    %20 = arith.cmpi ne, %19, %c0_i32_15 : i32
    scf.if %20 {
      %c0_16 = arith.constant 0 : index
      %c0_17 = arith.constant 0 : index
      %21 = vector.load %arg2[%c0_16, %c0_17] : memref<16x32xf32, #tpu.memory_space<vmem>>, vector<16x32xf32>
      %c0_18 = arith.constant 0 : index
      %c0_19 = arith.constant 0 : index
      %22 = vector.load %arg10[%c0_18, %c0_19] : memref<16x32xf32, #tpu.memory_space<vmem>>, vector<16x32xf32>
      %c0_20 = arith.constant 0 : index
      %c0_21 = arith.constant 0 : index
      %23 = vector.load %arg6[%c0_20, %c0_21] : memref<1x32xf32, #tpu.memory_space<vmem>>, vector<1x32xf32>
      %24 = vector.broadcast %23 : vector<1x32xf32> to vector<16x32xf32>
      %25 = arith.addf %22, %24 : vector<16x32xf32>
      %26 = arith.addf %21, %25 : vector<16x32xf32>
      %cst_22 = arith.constant dense<0.000000e+00> : vector<16xf32>
      %27 = vector.multi_reduction <add>, %26, %cst_22 [1] : vector<16x32xf32> to vector<16xf32>
      %28 = vector.shape_cast %27 : vector<16xf32> to vector<16x1xf32>
      %cst_23 = arith.constant 3.200000e+01 : f32
      %29 = vector.broadcast %cst_23 : f32 to vector<16x1xf32>
      %30 = arith.divf %28, %29 : vector<16x1xf32>
      %31 = vector.broadcast %30 : vector<16x1xf32> to vector<16x32xf32>
      %32 = arith.subf %26, %31 : vector<16x32xf32>
      %33 = arith.mulf %32, %32 : vector<16x32xf32>
      %cst_24 = arith.constant dense<0.000000e+00> : vector<16xf32>
      %34 = vector.multi_reduction <add>, %33, %cst_24 [1] : vector<16x32xf32> to vector<16xf32>
      %35 = vector.shape_cast %34 : vector<16xf32> to vector<16x1xf32>
      %cst_25 = arith.constant 3.100000e+01 : f32
      %36 = vector.broadcast %cst_25 : f32 to vector<16x1xf32>
      %37 = arith.divf %35, %36 : vector<16x1xf32>
      %38 = math.sqrt %37 : vector<16x1xf32>
      %c0_26 = arith.constant 0 : index
      %c0_27 = arith.constant 0 : index
      %39 = vector.load %arg7[%c0_26, %c0_27] : memref<1x32xf32, #tpu.memory_space<vmem>>, vector<1x32xf32>
      %40 = vector.broadcast %39 : vector<1x32xf32> to vector<16x32xf32>
      %41 = arith.mulf %40, %32 : vector<16x32xf32>
      %cst_28 = arith.constant 9.99999997E-7 : f32
      %42 = vector.broadcast %cst_28 : f32 to vector<16x1xf32>
      %43 = arith.addf %38, %42 : vector<16x1xf32>
      %44 = vector.broadcast %43 : vector<16x1xf32> to vector<16x32xf32>
      %45 = arith.divf %41, %44 : vector<16x32xf32>
      %c0_29 = arith.constant 0 : index
      %c0_30 = arith.constant 0 : index
      %46 = vector.load %arg8[%c0_29, %c0_30] : memref<1x32xf32, #tpu.memory_space<vmem>>, vector<1x32xf32>
      %47 = vector.broadcast %46 : vector<1x32xf32> to vector<16x32xf32>
      %48 = arith.addf %45, %47 : vector<16x32xf32>
      %c0_31 = arith.constant 0 : index
      %c0_32 = arith.constant 0 : index
      %49 = vector.load %arg9[%c0_31, %c0_32] : memref<16x32xf32, #tpu.memory_space<vmem>>, vector<16x32xf32>
      tpu.vector_store %arg9[%c0_31, %c0_32], %48 {strides = array<i32>} : memref<16x32xf32, #tpu.memory_space<vmem>>, vector<16x32xf32>,
    } else {
    }
    return
  }
  func.func @transform_0(%arg0: i32, %arg1: i32) -> (i32, i32) {
    %c0_i32 = arith.constant 0 : i32
    %c0_i32_0 = arith.constant 0 : i32
    return %arg0, %c0_i32 : i32, i32
  }
  func.func @transform_1(%arg0: i32, %arg1: i32) -> (i32, i32) {
    %c0_i32 = arith.constant 0 : i32
    %c0_i32_0 = arith.constant 0 : i32
    return %c0_i32, %arg1 : i32, i32
  }
  func.func @transform_2(%arg0: i32, %arg1: i32) -> (i32, i32) {
    %c0_i32 = arith.constant 0 : i32
    %c0_i32_0 = arith.constant 0 : i32
    return %c0_i32, %arg1 : i32, i32
  }
  func.func @transform_3(%arg0: i32, %arg1: i32) -> (i32, i32) {
    %c0_i32 = arith.constant 0 : i32
    %c0_i32_0 = arith.constant 0 : i32
    return %arg1, %c0_i32 : i32, i32
  }
  func.func @transform_4(%arg0: i32, %arg1: i32) -> (i32, i32) {
    %c0_i32 = arith.constant 0 : i32
    %c0_i32_0 = arith.constant 0 : i32
    %c0_i32_1 = arith.constant 0 : i32
    return %c0_i32, %c0_i32_0 : i32, i32
  }
  func.func @transform_5(%arg0: i32, %arg1: i32) -> (i32, i32) {
    %c0_i32 = arith.constant 0 : i32
    %c0_i32_0 = arith.constant 0 : i32
    %c0_i32_1 = arith.constant 0 : i32
    return %c0_i32, %c0_i32_0 : i32, i32
  }
  func.func @transform_6(%arg0: i32, %arg1: i32) -> (i32, i32) {
    %c0_i32 = arith.constant 0 : i32
    %c0_i32_0 = arith.constant 0 : i32
    %c0_i32_1 = arith.constant 0 : i32
    return %c0_i32, %c0_i32_0 : i32, i32
  }
  func.func @transform_7(%arg0: i32, %arg1: i32) -> (i32, i32) {
    %c0_i32 = arith.constant 0 : i32
    %c0_i32_0 = arith.constant 0 : i32
    return %arg0, %c0_i32 : i32, i32
  }
}

module attributes {stable_mosaic.version = 11 : i64} {
  func.func @attn_kernel(%arg0: i32, %arg1: memref<1x8x128xbf16, #tpu.memory_space<vmem>>, %arg2: memref<1x16x128xbf16, #tpu.memory_space<vmem>>, %arg3: memref<1x16x128xbf16, #tpu.memory_space<vmem>>, %arg4: memref<1x1x16xf32, #tpu.memory_space<vmem>>, %arg5: memref<1x8x128xbf16, #tpu.memory_space<vmem>>) attributes {dimension_semantics = [#tpu.dimension_semantics<parallel>], iteration_bounds = array<i64: 2>, scalar_prefetch = 0 : i64, scratch_operands = 0 : i64, tpu.core_type = #tpu.core_type<tc>, window_params = [{transform_indices = @transform_0, window_bounds = array<i64: 1, 8, 128>}, {transform_indices = @transform_1, window_bounds = array<i64: 1, 16, 128>}, {transform_indices = @transform_2, window_bounds = array<i64: 1, 16, 128>}, {transform_indices = @transform_3, window_bounds = array<i64: 1, 1, 16>}, {transform_indices = @transform_4, window_bounds = array<i64: 1, 8, 128>}]} {
    %c0 = arith.constant 0 : index
    %c0_0 = arith.constant 0 : index
    %c0_1 = arith.constant 0 : index
    %0 = vector.load %arg4[%c0, %c0_0, %c0_1] : memref<1x1x16xf32, #tpu.memory_space<vmem>>, vector<1x1x16xf32>
    %1 = vector.shape_cast %0 : vector<1x1x16xf32> to vector<1x16xf32>
    %c0_2 = arith.constant 0 : index
    %c0_3 = arith.constant 0 : index
    %c0_4 = arith.constant 0 : index
    %2 = vector.load %arg1[%c0_2, %c0_3, %c0_4] : memref<1x8x128xbf16, #tpu.memory_space<vmem>>, vector<1x8x8xbf16>
    %3 = vector.shape_cast %2 : vector<1x8x8xbf16> to vector<8x8xbf16>
    %c0_5 = arith.constant 0 : index
    %c0_6 = arith.constant 0 : index
    %c0_7 = arith.constant 0 : index
    %4 = vector.load %arg2[%c0_5, %c0_6, %c0_7] : memref<1x16x128xbf16, #tpu.memory_space<vmem>>, vector<1x16x8xbf16>
    %5 = vector.shape_cast %4 : vector<1x16x8xbf16> to vector<16x8xbf16>
    %c0_8 = arith.constant 0 : index
    %c0_9 = arith.constant 0 : index
    %c0_10 = arith.constant 0 : index
    %6 = vector.load %arg3[%c0_8, %c0_9, %c0_10] : memref<1x16x128xbf16, #tpu.memory_space<vmem>>, vector<1x16x8xbf16>
    %7 = vector.shape_cast %6 : vector<1x16x8xbf16> to vector<16x8xbf16>
    %cst = arith.constant dense<0.000000e+00> : vector<8x16xf32>
    %8 = tpu.matmul %3, %5, %cst {dimension_numbers = #tpu.dot_dimension_numbers<[1], [1], [0], [0], [0, 0, 1, 0], [], []>} : vector<8x8xbf16>, vector<16x8xbf16>, vector<8x16xf32> -> vector<8x16xf32>
    %cst_11 = arith.constant 0.353553385 : f32
    %9 = vector.broadcast %cst_11 : f32 to vector<8x16xf32>
    %10 = arith.mulf %8, %9 : vector<8x16xf32>
    %cst_12 = arith.constant 0.000000e+00 : f32
    %11 = vector.broadcast %cst_12 : f32 to vector<1x16xf32>
    %12 = arith.cmpf ogt, %1, %11 : vector<1x16xf32>
    %cst_13 = arith.constant -1.000000e+09 : f32
    %13 = vector.shape_cast %12 : vector<1x16xi1> to vector<1x16xi1>
    %14 = vector.broadcast %13 : vector<1x16xi1> to vector<8x16xi1>
    %15 = vector.broadcast %cst_13 : f32 to vector<8x16xf32>
    %16 = arith.select %14, %10, %15 : vector<8x16xi1>, vector<8x16xf32>
    %cst_14 = arith.constant dense<0xFF800000> : vector<8xf32>
    %17 = vector.multi_reduction <maximumf>, %16, %cst_14 [1] : vector<8x16xf32> to vector<8xf32>
    %18 = vector.shape_cast %17 : vector<8xf32> to vector<8x1xf32>
    %19 = vector.broadcast %18 : vector<8x1xf32> to vector<8x16xf32>
    %20 = arith.subf %16, %19 : vector<8x16xf32>
    %21 = math.exp %20 : vector<8x16xf32>
    %cst_15 = arith.constant dense<0.000000e+00> : vector<8xf32>
    %22 = vector.multi_reduction <add>, %21, %cst_15 [1] : vector<8x16xf32> to vector<8xf32>
    %23 = vector.shape_cast %22 : vector<8xf32> to vector<8x1xf32>
    %24 = tpu.reciprocal %23 {approx = true} : vector<8x1xf32> -> vector<8x1xf32>
    %25 = arith.truncf %21 : vector<8x16xf32> to vector<8x16xbf16>
    %cst_16 = arith.constant dense<0.000000e+00> : vector<8x8xf32>
    %26 = tpu.matmul %25, %7, %cst_16 {dimension_numbers = #tpu.dot_dimension_numbers<[1], [0], [0], [1], [0, 0, 1, 1], [], []>} : vector<8x16xbf16>, vector<16x8xbf16>, vector<8x8xf32> -> vector<8x8xf32>
    %27 = vector.broadcast %24 : vector<8x1xf32> to vector<8x8xf32>
    %28 = arith.mulf %26, %27 : vector<8x8xf32>
    %c0_17 = arith.constant 0 : index
    %c0_18 = arith.constant 0 : index
    %c8 = arith.constant 8 : index
    %29 = vector.load %arg1[%c0_17, %c0_18, %c8] : memref<1x8x128xbf16, #tpu.memory_space<vmem>>, vector<1x8x8xbf16>
    %30 = vector.shape_cast %29 : vector<1x8x8xbf16> to vector<8x8xbf16>
    %c0_19 = arith.constant 0 : index
    %c0_20 = arith.constant 0 : index
    %c8_21 = arith.constant 8 : index
    %31 = vector.load %arg2[%c0_19, %c0_20, %c8_21] : memref<1x16x128xbf16, #tpu.memory_space<vmem>>, vector<1x16x8xbf16>
    %32 = vector.shape_cast %31 : vector<1x16x8xbf16> to vector<16x8xbf16>
    %c0_22 = arith.constant 0 : index
    %c0_23 = arith.constant 0 : index
    %c8_24 = arith.constant 8 : index
    %33 = vector.load %arg3[%c0_22, %c0_23, %c8_24] : memref<1x16x128xbf16, #tpu.memory_space<vmem>>, vector<1x16x8xbf16>
    %34 = vector.shape_cast %33 : vector<1x16x8xbf16> to vector<16x8xbf16>
    %cst_25 = arith.constant dense<0.000000e+00> : vector<8x16xf32>
    %35 = tpu.matmul %30, %32, %cst_25 {dimension_numbers = #tpu.dot_dimension_numbers<[1], [1], [0], [0], [0, 0, 1, 0], [], []>} : vector<8x8xbf16>, vector<16x8xbf16>, vector<8x16xf32> -> vector<8x16xf32>
    %cst_26 = arith.constant 0.353553385 : f32
    %36 = vector.broadcast %cst_26 : f32 to vector<8x16xf32>
    %37 = arith.mulf %35, %36 : vector<8x16xf32>
    %cst_27 = arith.constant 0.000000e+00 : f32
    %38 = vector.broadcast %cst_27 : f32 to vector<1x16xf32>
    %39 = arith.cmpf ogt, %1, %38 : vector<1x16xf32>
    %cst_28 = arith.constant -1.000000e+09 : f32
    %40 = vector.shape_cast %39 : vector<1x16xi1> to vector<1x16xi1>
    %41 = vector.broadcast %40 : vector<1x16xi1> to vector<8x16xi1>
    %42 = vector.broadcast %cst_28 : f32 to vector<8x16xf32>
    %43 = arith.select %41, %37, %42 : vector<8x16xi1>, vector<8x16xf32>
    %cst_29 = arith.constant dense<0xFF800000> : vector<8xf32>
    %44 = vector.multi_reduction <maximumf>, %43, %cst_29 [1] : vector<8x16xf32> to vector<8xf32>
    %45 = vector.shape_cast %44 : vector<8xf32> to vector<8x1xf32>
    %46 = vector.broadcast %45 : vector<8x1xf32> to vector<8x16xf32>
    %47 = arith.subf %43, %46 : vector<8x16xf32>
    %48 = math.exp %47 : vector<8x16xf32>
    %cst_30 = arith.constant dense<0.000000e+00> : vector<8xf32>
    %49 = vector.multi_reduction <add>, %48, %cst_30 [1] : vector<8x16xf32> to vector<8xf32>
    %50 = vector.shape_cast %49 : vector<8xf32> to vector<8x1xf32>
    %51 = tpu.reciprocal %50 {approx = true} : vector<8x1xf32> -> vector<8x1xf32>
    %52 = arith.truncf %48 : vector<8x16xf32> to vector<8x16xbf16>
    %cst_31 = arith.constant dense<0.000000e+00> : vector<8x8xf32>
    %53 = tpu.matmul %52, %34, %cst_31 {dimension_numbers = #tpu.dot_dimension_numbers<[1], [0], [0], [1], [0, 0, 1, 1], [], []>} : vector<8x16xbf16>, vector<16x8xbf16>, vector<8x8xf32> -> vector<8x8xf32>
    %54 = vector.broadcast %51 : vector<8x1xf32> to vector<8x8xf32>
    %55 = arith.mulf %53, %54 : vector<8x8xf32>
    %c0_32 = arith.constant 0 : index
    %c0_33 = arith.constant 0 : index
    %c16 = arith.constant 16 : index
    %56 = vector.load %arg1[%c0_32, %c0_33, %c16] : memref<1x8x128xbf16, #tpu.memory_space<vmem>>, vector<1x8x8xbf16>
    %57 = vector.shape_cast %56 : vector<1x8x8xbf16> to vector<8x8xbf16>
    %c0_34 = arith.constant 0 : index
    %c0_35 = arith.constant 0 : index
    %c16_36 = arith.constant 16 : index
    %58 = vector.load %arg2[%c0_34, %c0_35, %c16_36] : memref<1x16x128xbf16, #tpu.memory_space<vmem>>, vector<1x16x8xbf16>
    %59 = vector.shape_cast %58 : vector<1x16x8xbf16> to vector<16x8xbf16>
    %c0_37 = arith.constant 0 : index
    %c0_38 = arith.constant 0 : index
    %c16_39 = arith.constant 16 : index
    %60 = vector.load %arg3[%c0_37, %c0_38, %c16_39] : memref<1x16x128xbf16, #tpu.memory_space<vmem>>, vector<1x16x8xbf16>
    %61 = vector.shape_cast %60 : vector<1x16x8xbf16> to vector<16x8xbf16>
    %cst_40 = arith.constant dense<0.000000e+00> : vector<8x16xf32>
    %62 = tpu.matmul %57, %59, %cst_40 {dimension_numbers = #tpu.dot_dimension_numbers<[1], [1], [0], [0], [0, 0, 1, 0], [], []>} : vector<8x8xbf16>, vector<16x8xbf16>, vector<8x16xf32> -> vector<8x16xf32>
    %cst_41 = arith.constant 0.353553385 : f32
    %63 = vector.broadcast %cst_41 : f32 to vector<8x16xf32>
    %64 = arith.mulf %62, %63 : vector<8x16xf32>
    %cst_42 = arith.constant 0.000000e+00 : f32
    %65 = vector.broadcast %cst_42 : f32 to vector<1x16xf32>
    %66 = arith.cmpf ogt, %1, %65 : vector<1x16xf32>
    %cst_43 = arith.constant -1.000000e+09 : f32
    %67 = vector.shape_cast %66 : vector<1x16xi1> to vector<1x16xi1>
    %68 = vector.broadcast %67 : vector<1x16xi1> to vector<8x16xi1>
    %69 = vector.broadcast %cst_43 : f32 to vector<8x16xf32>
    %70 = arith.select %68, %64, %69 : vector<8x16xi1>, vector<8x16xf32>
    %cst_44 = arith.constant dense<0xFF800000> : vector<8xf32>
    %71 = vector.multi_reduction <maximumf>, %70, %cst_44 [1] : vector<8x16xf32> to vector<8xf32>
    %72 = vector.shape_cast %71 : vector<8xf32> to vector<8x1xf32>
    %73 = vector.broadcast %72 : vector<8x1xf32> to vector<8x16xf32>
    %74 = arith.subf %70, %73 : vector<8x16xf32>
    %75 = math.exp %74 : vector<8x16xf32>
    %cst_45 = arith.constant dense<0.000000e+00> : vector<8xf32>
    %76 = vector.multi_reduction <add>, %75, %cst_45 [1] : vector<8x16xf32> to vector<8xf32>
    %77 = vector.shape_cast %76 : vector<8xf32> to vector<8x1xf32>
    %78 = tpu.reciprocal %77 {approx = true} : vector<8x1xf32> -> vector<8x1xf32>
    %79 = arith.truncf %75 : vector<8x16xf32> to vector<8x16xbf16>
    %cst_46 = arith.constant dense<0.000000e+00> : vector<8x8xf32>
    %80 = tpu.matmul %79, %61, %cst_46 {dimension_numbers = #tpu.dot_dimension_numbers<[1], [0], [0], [1], [0, 0, 1, 1], [], []>} : vector<8x16xbf16>, vector<16x8xbf16>, vector<8x8xf32> -> vector<8x8xf32>
    %81 = vector.broadcast %78 : vector<8x1xf32> to vector<8x8xf32>
    %82 = arith.mulf %80, %81 : vector<8x8xf32>
    %c0_47 = arith.constant 0 : index
    %c0_48 = arith.constant 0 : index
    %c24 = arith.constant 24 : index
    %83 = vector.load %arg1[%c0_47, %c0_48, %c24] : memref<1x8x128xbf16, #tpu.memory_space<vmem>>, vector<1x8x8xbf16>
    %84 = vector.shape_cast %83 : vector<1x8x8xbf16> to vector<8x8xbf16>
    %c0_49 = arith.constant 0 : index
    %c0_50 = arith.constant 0 : index
    %c24_51 = arith.constant 24 : index
    %85 = vector.load %arg2[%c0_49, %c0_50, %c24_51] : memref<1x16x128xbf16, #tpu.memory_space<vmem>>, vector<1x16x8xbf16>
    %86 = vector.shape_cast %85 : vector<1x16x8xbf16> to vector<16x8xbf16>
    %c0_52 = arith.constant 0 : index
    %c0_53 = arith.constant 0 : index
    %c24_54 = arith.constant 24 : index
    %87 = vector.load %arg3[%c0_52, %c0_53, %c24_54] : memref<1x16x128xbf16, #tpu.memory_space<vmem>>, vector<1x16x8xbf16>
    %88 = vector.shape_cast %87 : vector<1x16x8xbf16> to vector<16x8xbf16>
    %cst_55 = arith.constant dense<0.000000e+00> : vector<8x16xf32>
    %89 = tpu.matmul %84, %86, %cst_55 {dimension_numbers = #tpu.dot_dimension_numbers<[1], [1], [0], [0], [0, 0, 1, 0], [], []>} : vector<8x8xbf16>, vector<16x8xbf16>, vector<8x16xf32> -> vector<8x16xf32>
    %cst_56 = arith.constant 0.353553385 : f32
    %90 = vector.broadcast %cst_56 : f32 to vector<8x16xf32>
    %91 = arith.mulf %89, %90 : vector<8x16xf32>
    %cst_57 = arith.constant 0.000000e+00 : f32
    %92 = vector.broadcast %cst_57 : f32 to vector<1x16xf32>
    %93 = arith.cmpf ogt, %1, %92 : vector<1x16xf32>
    %cst_58 = arith.constant -1.000000e+09 : f32
    %94 = vector.shape_cast %93 : vector<1x16xi1> to vector<1x16xi1>
    %95 = vector.broadcast %94 : vector<1x16xi1> to vector<8x16xi1>
    %96 = vector.broadcast %cst_58 : f32 to vector<8x16xf32>
    %97 = arith.select %95, %91, %96 : vector<8x16xi1>, vector<8x16xf32>
    %cst_59 = arith.constant dense<0xFF800000> : vector<8xf32>
    %98 = vector.multi_reduction <maximumf>, %97, %cst_59 [1] : vector<8x16xf32> to vector<8xf32>
    %99 = vector.shape_cast %98 : vector<8xf32> to vector<8x1xf32>
    %100 = vector.broadcast %99 : vector<8x1xf32> to vector<8x16xf32>
    %101 = arith.subf %97, %100 : vector<8x16xf32>
    %102 = math.exp %101 : vector<8x16xf32>
    %cst_60 = arith.constant dense<0.000000e+00> : vector<8xf32>
    %103 = vector.multi_reduction <add>, %102, %cst_60 [1] : vector<8x16xf32> to vector<8xf32>
    %104 = vector.shape_cast %103 : vector<8xf32> to vector<8x1xf32>
    %105 = tpu.reciprocal %104 {approx = true} : vector<8x1xf32> -> vector<8x1xf32>
    %106 = arith.truncf %102 : vector<8x16xf32> to vector<8x16xbf16>
    %cst_61 = arith.constant dense<0.000000e+00> : vector<8x8xf32>
    %107 = tpu.matmul %106, %88, %cst_61 {dimension_numbers = #tpu.dot_dimension_numbers<[1], [0], [0], [1], [0, 0, 1, 1], [], []>} : vector<8x16xbf16>, vector<16x8xbf16>, vector<8x8xf32> -> vector<8x8xf32>
    %108 = vector.broadcast %105 : vector<8x1xf32> to vector<8x8xf32>
    %109 = arith.mulf %107, %108 : vector<8x8xf32>
    %cst_62 = arith.constant 0.000000e+00 : f32
    %110 = vector.broadcast %cst_62 : f32 to vector<8x96xf32>
    %111 = tpu.concatenate %28, %55, %82, %109, %110 in 1 : vector<8x8xf32>, vector<8x8xf32>, vector<8x8xf32>, vector<8x8xf32>, vector<8x96xf32> -> vector<8x128xf32>
    %112 = arith.truncf %111 : vector<8x128xf32> to vector<8x128xbf16>
    %c0_63 = arith.constant 0 : index
    %c0_64 = arith.constant 0 : index
    %c0_65 = arith.constant 0 : index
    %113 = vector.load %arg5[%c0_63, %c0_64, %c0_65] : memref<1x8x128xbf16, #tpu.memory_space<vmem>>, vector<1x8x128xbf16>
    %114 = vector.shape_cast %113 : vector<1x8x128xbf16> to vector<8x128xbf16>
    %115 = vector.shape_cast %112 : vector<8x128xbf16> to vector<1x8x128xbf16>
    tpu.vector_store %arg5[%c0_63, %c0_64, %c0_65], %115 {strides = array<i32>} : memref<1x8x128xbf16, #tpu.memory_space<vmem>>, vector<1x8x128xbf16>,
    return
  }
  func.func @transform_0(%arg0: i32) -> (i32, i32, i32) {
    %c0_i32 = arith.constant 0 : i32
    %c0_i32_0 = arith.constant 0 : i32
    %c0_i32_1 = arith.constant 0 : i32
    return %arg0, %c0_i32, %c0_i32_0 : i32, i32, i32
  }
  func.func @transform_1(%arg0: i32) -> (i32, i32, i32) {
    %c0_i32 = arith.constant 0 : i32
    %c0_i32_0 = arith.constant 0 : i32
    %c0_i32_1 = arith.constant 0 : i32
    return %arg0, %c0_i32, %c0_i32_0 : i32, i32, i32
  }
  func.func @transform_2(%arg0: i32) -> (i32, i32, i32) {
    %c0_i32 = arith.constant 0 : i32
    %c1_i32 = arith.constant 1 : i32
    %c0_i32_0 = arith.constant 0 : i32
    return %arg0, %c0_i32, %c1_i32 : i32, i32, i32
  }
  func.func @transform_3(%arg0: i32) -> (i32, i32, i32) {
    %c0_i32 = arith.constant 0 : i32
    %c0_i32_0 = arith.constant 0 : i32
    %c0_i32_1 = arith.constant 0 : i32
    return %arg0, %c0_i32, %c0_i32_0 : i32, i32, i32
  }
  func.func @transform_4(%arg0: i32) -> (i32, i32, i32) {
    %c0_i32 = arith.constant 0 : i32
    %c0_i32_0 = arith.constant 0 : i32
    %c0_i32_1 = arith.constant 0 : i32
    return %arg0, %c0_i32, %c0_i32_0 : i32, i32, i32
  }
}

</mosaic_0001>

<bundles_post_ra>
// kernel: _lambda_.8
= control target key start
LH: loop header
LB: loop body
LE: loop exit
PB: predicated region body
PF: predicated region fallthrough
CT: control target
= control target key end

     0   :  { %v235_v0 = vmov 0.0   ;;  %vm236_vm0 = vmmov 0   ;;  %v237_v3 = vmov 0   ;;  %vm79_vm1 = vcmask 261120   ;;  %s294_s1 = inlined_call_operand.vmem [shape: bf16[32,384], index: 1, kind: input, shape index: {}]   ;;  %s295_s0 = inlined_call_operand.vmem [shape: bf16[16,32], index: 0, kind: input, shape index: {}]   ;;  %s296_s2 = inlined_call_operand.vmem [shape: f32[1,384], index: 2, kind: input, shape index: {}]   ;;  %s297_s3 = inlined_call_operand.vmem [shape: bf16[16,384], index: 3, kind: output, shape index: {}]  }
   0x1   :  { %215 = vmatprep.subr.bf16.mxu1 %v235_v0  ;;  %v226_v1 = vld [vmem:[%s294_s1 + $0x4] ss:$12 sps:$4 sm:$0xff]   ;;  %219 = vmatprep.mubr.msk.bf16.mxu1 %vm236_vm0, %v235_v0  ;;  %v228_v2 = vld [vmem:[%s294_s1 + $0x8] ss:$12 sps:$4 sm:$0xff]   ;;  %v229_v4 = vld [vmem:[%s294_s1] ss:$12 sps:$4 sm:$0xff]   ;;  %v27_v9 = vlaneseq }
   0x2   :  { %115 = vmatprep.mubr.bf16.mxu0 %v237_v3  ;;  %83 = vmatprep.subr.bf16.mxu0 %v226_v1  ;;  %v230_v5 = vld [vmem:[%s294_s1 + $0x1c] ss:$12 sps:$4 sm:$0xff]   ;;  %v232_v6 = vld [vmem:[%s294_s1 + $0x20] ss:$12 sps:$4 sm:$0xff]   ;;  %v233_v7 = vld [vmem:[%s294_s1 + $0x18] ss:$12 sps:$4 sm:$0xff]  }
   0x3   :  { %216 = vmatpush3.bf16.msra.mxu1 %v228_v2  ;;  %84 = vmatpush1.bf16.msra.mxu0 %v229_v4  ;;  %v234_v8 = vld [vmem:[%s295_s0] sm:$0xff]   ;;  %v28_v10 = vshrl.u32 %v27_v9, 7 }
   0x4   :  { %217 = vmatprep.subr.bf16.mxu1 %v235_v0  ;;  %85 = vmatprep.subr.bf16.mxu0 %v230_v5  ;;  %v25_v12 = vld [vmem:[%s296_s2] sm:$0x7] }
   0x5   :  { %v37_v11 = vsub.s32 2, %v28_v10  ;;  %v29_v13 = vsub.s32 0, %v28_v10  ;;  %v33_v14 = vsub.s32 1, %v28_v10 }
   0x7   :  { %218 = vmatpush3.bf16.msra.mxu1 %v232_v6  ;;  %86 = vmatpush1.bf16.msra.mxu0 %v233_v7  ;;  %v38_v15 = vrot.slane %v25_v12, %v37_v11  ;;  %v30_v16 = vrot.slane %v25_v12, %v29_v13  ;;  %v34_v17 = vrot.slane %v25_v12, %v33_v14 }
   0xa   :  { %220 = vmatmul.mubr.msk.bf16.vlgmr.msra.gmra.mrb[0].mxu1 %vm79_vm1, %v234_v8  ;;  %202 = vmatmul.mubr.msk.bf16.vlgmr.msra.gmra.mrb[0].mxu0 %vm79_vm1, %v234_v8 }
  0xdd   :  { %v160_v18 = vpop.f32.mrb[0].mxu1  ;;  %v117_v20 = vpop.f32.mrb[0].mxu0 }
  0xde   :  { %v161_v19 = vadd.f32 %v160_v18, %v38_v15  ;;  %v221_v21 = vpop.f32.mrb[1].mxu1  ;;  %v118_v22 = vadd.f32 %v117_v20, %v30_v16  ;;  %v119_v23 = vpop.f32.mrb[1].mxu0 }
  0xdf   :  { %v163_v24 = vpop.f32.mrb[2].mxu1  ;;  %v120_v26 = vadd.f32 %v119_v23, %v34_v17  ;;  %v121_v28 = vpop.f32.mrb[2].mxu0 }
  0xe0   :  { %v209_v25 = vpack.c.bf16 %v161_v19, %v161_v19  ;;  %v164_v27 = vadd.f32 %v163_v24, %v38_v15  ;;  %v222_v29 = vpop.f32.mrb[3].mxu1  ;;  %v122_v30 = vadd.f32 %v121_v28, %v30_v16  ;;  %v123_v31 = vpop.f32.mrb[3].mxu0 }
  0xe1   :  { %v208_v32 = vpack.c.bf16 %v120_v26, %v118_v22  ;;  %v124_v34 = vadd.f32 %v123_v31, %v34_v17 }
  0xe2   :  { %188 = vst [vmem:[%s297_s3 + $0x8] sm:$0xf] %v209_v25  ;;  %v211_v33 = vpack.c.bf16 %v164_v27, %v164_v27 }
  0xe3   :  { %187 = vst [vmem:[%s297_s3] sm:$0xff] %v208_v32  ;;  %v210_v35 = vpack.c.bf16 %v124_v34, %v122_v30 }
  0xe4   :  { %190 = vst [vmem:[%s297_s3 + $0x14] sm:$0xf] %v211_v33 }
  0xe5   :  { %189 = vst [vmem:[%s297_s3 + $0xc] sm:$0xff] %v210_v35 }

// kernel: _lambda_.9
= control target key start
LH: loop header
LB: loop body
LE: loop exit
PB: predicated region body
PF: predicated region fallthrough
CT: control target
= control target key end

     0   :  { %s976_s15 = smov 0   ;;  %s1088_s0 = inlined_call_operand.vmem [shape: bf16[2,8,384], index: 0, kind: input, shape index: {}, may-alias: {0,1,2}]   ;;  %s1089_s1 = inlined_call_operand.vmem [shape: bf16[2,8,384], index: 1, kind: input, shape index: {}, may-alias: {0,1,2}]   ;;  %s1090_s2 = inlined_call_operand.vmem [shape: bf16[2,8,384], index: 2, kind: input, shape index: {}, may-alias: {0,1,2}]   ;;  %s1091_s3 = inlined_call_operand.vmem [shape: f32[1,8,8], index: 3, kind: input, shape index: {}]   ;;  %s1092_s4 = inlined_call_operand.vmem [shape: bf16[2,8,128], index: 4, kind: output, shape index: {}]  }
   0x1 LB: > { %s811_s16 = sadd.s32 4294967295, %s941_s15   ;;  %p815_p0 = scmp.ge.s32.totalorder %s941_s15, 1  ;;  %s941_s15 = sphi %s976_s15, %s14_s15  }
   0x2   : > { %p184_p1 = scmp.lt.s32.totalorder %s941_s15, 3 }
   0x4   : > { %p185_p2 = pnand %p815_p0, %p184_p1 }
   0x5   : > { %p221_p3 = scmp.lt.s32.totalorder (!%p185_p2), %s811_s16, 1  ;;  %v943_v0 = vmov (!%p185_p2), 0.0   ;;  %vm944_vm0 = vmmov (!%p185_p2), 0   ;;  %vm247_vm1 = vcmask (!%p185_p2), 64512   ;;  %s945_s24 = smov (!%p185_p2), 120   ;;  %v1016_v6 = vld [vmem:[%s1091_s3] sm:$0xff] (!%p185_p2) }
   0x6   : > { %188 = sbr.rel (%p185_p2) target bundleno = 1171 (0x493), region = 36  ;;  %851 = vmatprep.subr.bf16.mxu0 (!%p185_p2), %v943_v0  ;;  %853 = vmatprep.mubr.msk.bf16.mxu0 (!%p185_p2), %vm944_vm0, %v943_v0  ;;  %s946_s25 = smov (!%p185_p2), 112   ;;  %vm295_vm2 = vcmp.gt.f32.partialorder (!%p185_p2), %v1016_v6, 0.0  ;;  %vm311_vm3 = vcmask (!%p185_p2), 1043456   ;;  %vm714_vm4 = vcmask (!%p185_p2), 130048   ;;  %vm716_vm5 = vcmask (!%p185_p2), 195584  }
   0x7   : > { %857 = vmatprep.subr.bf16.mxu1 (!%p185_p2), %v943_v0  ;;  %859 = vmatprep.mubr.msk.bf16.mxu1 (!%p185_p2), %vm944_vm0, %v943_v0  ;;  %s947_s26 = smov (!%p185_p2), 104   ;;  %s948_s6 = smov (!%p185_p2), 8   ;;  %vm718_vm6 = vcmask (!%p185_p2), 261120  }
   0x8   : > { %s949_s7 = smov (!%p185_p2), 16   ;;  %s950_s8 = smov (!%p185_p2), 24  }
   0xd   : > { %s1094_s16 = smov (!%p221_p3, %s811_s16), 1 }
   0xe   : > { %s993_s17 = smul.u32 12, %s1094_s16  ;;  %s819_s9 = sshll.u32 %s1094_s16, 2 }
   0xf   : > { %s241_s12 = scalar_lea.vmem %s1092_s4, %s819_s9 }
  0x10   : > { %s767_s20 = scalar_lea.vmem %s1089_s1, %s993_s17  ;;  %s225_s23 = scalar_lea.vmem %s1088_s0, %s993_s17 }
  0x11   : > { %v820_v1 = vld [vmem:[%s767_s20 + $0x4] sm:$0xf]  ;;  %v244_v3 = vld [vmem:[%s225_s23] sm:$0xf]  ;;  %s771_s5 = scalar_lea.vmem %s1090_s2, %s993_s17 }
  0x12   : > { %v252_v2 = vsel %vm247_vm1, %v820_v1, 0  ;;  %v824_v4 = vcombine.low %v244_v3, %v244_v3  ;;  %v825_v5 = vcombine.low %v820_v1, %v820_v1  ;;  %v821_v14 = vld [vmem:[%s771_s5 + $0x8] sm:$0xf] }
  0x13   : > { %852 = vmatpush3.bf16.xpose.msra.mxu0 %v252_v2  ;;  %v313_v15 = vsel %vm311_vm3, %v821_v14, 0  ;;  %v827_v50 = vcombine.low %v821_v14, %v821_v14 }
  0x14   : > { %869 = vmatprep.subr.bf16.mxu0 %v943_v0  ;;  %359 = vrot.lane.b32.xlu1 %v824_v4, %s945_s24 }
  0x15   : > { %858 = vmatpush3.bf16.msra.mxu1 %v313_v15 }
  0x16   : > { %863 = vmatprep.subr.bf16.mxu1 %v943_v0 }
  0x18   : > { %479 = vrot.lane.b32.xlu1 %v825_v5, %s946_s25 }
  0x1a   : > { %854 = vmatmul.mubr.msk.bf16.vlgmr.msra.gmra.mrb[0].mxu0 %vm247_vm1, %v244_v3 }
  0x1b   : > { %871 = vmatprep.mubr.msk.bf16.mxu0 %vm944_vm0, %v943_v0 }
  0x1c   : > { %477 = vrot.lane.b32.xlu1 %v824_v4, %s946_s25 }
  0x20   : > { %591 = vrot.lane.b32.xlu1 %v825_v5, %s947_s26 }
  0x24   : > { %589 = vrot.lane.b32.xlu1 %v824_v4, %s947_s26 }
  0x86   : > { %v360_v21 = vpop.permute.xlu1 %359 }
  0x8a   : > { %v480_v24 = vpop.permute.xlu1 %479 }
  0x8b   : > { %v485_v25 = vsel %vm247_vm1, %v480_v24, 0 }
  0x8e   : > { %v478_v26 = vpop.permute.xlu1 %477 }
  0x92   : > { %v592_v27 = vpop.permute.xlu1 %591 }
  0x93   : > { %v597_v28 = vsel %vm247_vm1, %v592_v27, 0 }
  0x96   : > { %v590_v29 = vpop.permute.xlu1 %589 }
  0xed   : > { %v288_v7 = vpop.f32.mrb[0].mxu0 }
  0xee   : > { %v294_v8 = vmul.f32 0.35355338, %v288_v7  ;;  %v855_v9 = vpop.f32.mrb[1].mxu0 }
  0xef   : > { %v291_v10 = vpop.f32.mrb[2].mxu0 }
  0xf0   : > { %v856_v11 = vpop.f32.mrb[3].mxu0  ;;  %v296_v12 = vsel %vm295_vm2, %v294_v8, -1e+09 }
  0xf1   : > { %v297_v13 = vsel %vm247_vm1, %v296_v12, -inf }
  0xf2   : > { %298 = vmax.xlane.f32.xlu0 %v297_v13 }
 0x108   : > { %364 = vrot.lane.b32.xlu0 %v825_v5, %s945_s24 }
 0x17f   : > { %v299_v16 = vpop.xlane.xlu0 %298 }
 0x180   : > { %v300_v17 = vsub.f32 %v296_v12, %v299_v16 }
 0x182   : > { %v301_v18 = vmul.f32 1.442695, %v300_v17 }
 0x183   : > { %v365_v19 = vpop.permute.xlu0 %364 }
 0x184   : > { %919 = vpow2.f32 %v301_v18  ;;  %v370_v22 = vsel %vm247_vm1, %v365_v19, 0 }
 0x18e   : > { %v1029_v20 = vpop.eup %919 }
 0x18f   : > { %v307_v23 = vpack.c.bf16 %v1029_v20, %v1029_v20  ;;  %v303_v17 = vsel %vm247_vm1, %v1029_v20, 0.0 }
 0x191   : > { %860 = vmatmul.mubr.msk.bf16.vlgmr.msra.gmra.mrb[0].mxu1 %vm247_vm1, %v307_v23 }
 0x192   : > { %864 = vmatpush3.bf16.xpose.msra.mxu1 %v370_v22  ;;  %865 = vmatprep.mubr.msk.bf16.mxu1 %vm944_vm0, %v943_v0 }
 0x193   : > { %875 = vmatprep.subr.bf16.mxu1 %v943_v0 }
 0x199   : > { %866 = vmatmul.mubr.msk.bf16.vlgmr.msra.gmra.mrb[4].mxu1 %vm247_vm1, %v360_v21 }
 0x19a   : > { %876 = vmatpush3.bf16.xpose.msra.mxu1 %v485_v25  ;;  %877 = vmatprep.mubr.msk.bf16.mxu1 %vm944_vm0, %v943_v0 }
 0x19b   : > { %887 = vmatprep.subr.bf16.mxu1 %v943_v0 }
 0x1a1   : > { %878 = vmatmul.mubr.msk.bf16.vlgmr.msra.gmra.mrb[8].mxu1 %vm247_vm1, %v478_v26 }
 0x1a2   : > { %888 = vmatpush3.bf16.xpose.msra.mxu1 %v597_v28  ;;  %889 = vmatprep.mubr.msk.bf16.mxu1 %vm944_vm0, %v943_v0 }
 0x1a9   : > { %890 = vmatmul.mubr.msk.bf16.vlgmr.msra.gmra.mrb[12].mxu1 %vm247_vm1, %v590_v29 }
 0x264   : > { %v1048_v30 = vpop.f32.mrb[0].mxu1 }
 0x265   : > { %v861_v31 = vpop.f32.mrb[1].mxu1 }
 0x266   : > { %v352_v32 = vpop.f32.mrb[2].mxu1 }
 0x267   : > { %v862_v33 = vpop.f32.mrb[3].mxu1 }
 0x26c   : > { %v406_v34 = vpop.f32.mrb[4].mxu1 }
 0x26d   : > { %v412_v35 = vmul.f32 0.35355338, %v406_v34  ;;  %v867_v36 = vpop.f32.mrb[5].mxu1 }
 0x26e   : > { %v409_v37 = vpop.f32.mrb[6].mxu1 }
 0x26f   : > { %v868_v38 = vpop.f32.mrb[7].mxu1  ;;  %v413_v39 = vsel %vm295_vm2, %v412_v35, -1e+09 }
 0x270   : > { %v414_v40 = vsel %vm247_vm1, %v413_v39, -inf }
 0x271   : > { %415 = vmax.xlane.f32.xlu1 %v414_v40 }
 0x274   : > { %v521_v41 = vpop.f32.mrb[8].mxu1 }
 0x275   : > { %v527_v42 = vmul.f32 0.35355338, %v521_v41  ;;  %v879_v43 = vpop.f32.mrb[9].mxu1 }
 0x276   : > { %v524_v44 = vpop.f32.mrb[10].mxu1 }
 0x277   : > { %v528_v45 = vsel %vm295_vm2, %v527_v42, -1e+09  ;;  %v880_v46 = vpop.f32.mrb[11].mxu1 }
 0x278   : > { %v529_v47 = vsel %vm247_vm1, %v528_v45, -inf }
 0x279   : > { %530 = vmax.xlane.f32.xlu0 %v529_v47 }
 0x27c   : > { %v633_v48 = vpop.f32.mrb[12].mxu1 }
 0x27d   : > { %v891_v49 = vpop.f32.mrb[13].mxu1  ;;  %v639_v53 = vmul.f32 0.35355338, %v633_v48 }
 0x27e   : > { %v636_v51 = vpop.f32.mrb[14].mxu1 }
 0x27f   : > { %v892_v52 = vpop.f32.mrb[15].mxu1  ;;  %v640_v54 = vsel %vm295_vm2, %v639_v53, -1e+09 }
 0x280   : > { %v641_v55 = vsel %vm247_vm1, %v640_v54, -inf }
 0x282   : > { %540 = vrot.lane.b32.xlu1 %v827_v50, %s946_s25 }
 0x28f   : > { %428 = vrot.lane.b32.xlu0 %v827_v50, %s945_s24 }
 0x2a6   : > { %642 = vmax.xlane.f32.xlu1 %v641_v55 }
 0x2b7   : > { %652 = vrot.lane.b32.xlu1 %v827_v50, %s947_s26 }
 0x2fe   : > { %v416_v56 = vpop.xlane.xlu1 %415 }
 0x2ff   : > { %v417_v57 = vsub.f32 %v413_v39, %v416_v56 }
 0x301   : > { %v418_v58 = vmul.f32 1.442695, %v417_v57 }
 0x302   : > { %v541_v2 = vpop.permute.xlu1 %540 }
 0x303   : > { %921 = vpow2.f32 %v418_v58  ;;  %v546_v5 = vsel %vm311_vm3, %v541_v2, 0 }
 0x306   : > { %v531_v59 = vpop.xlane.xlu0 %530 }
 0x307   : > { %v532_v60 = vsub.f32 %v528_v45, %v531_v59 }
 0x309   : > { %v533_v61 = vmul.f32 1.442695, %v532_v60 }
 0x30a   : > { %v429_v62 = vpop.permute.xlu0 %428 }
 0x30b   : > { %923 = vpow2.f32 %v533_v61  ;;  %v434_v63 = vsel %vm311_vm3, %v429_v62, 0 }
 0x30c   : > { %870 = vmatpush3.bf16.msra.mxu0 %v434_v63 }
 0x30d   : > { %v922_v1 = vpop.eup %921  ;;  %881 = vmatprep.subr.bf16.mxu0 %v943_v0 }
 0x30e   : > { %v420_v3 = vsel %vm247_vm1, %v922_v1, 0.0  ;;  %v424_v4 = vpack.c.bf16 %v922_v1, %v922_v1 }
 0x30f   : > { %421 = vadd.xlane.f32.xlu0 %v420_v3 }
 0x310   : > { %872 = vmatmul.mubr.msk.bf16.vlgmr.msra.gmra.mrb[4].mxu0 %vm247_vm1, %v424_v4 }
 0x311   : > { %882 = vmatpush3.bf16.msra.mxu0 %v546_v5  ;;  %883 = vmatprep.mubr.msk.bf16.mxu0 %vm944_vm0, %v943_v0 }
 0x312   : > { %893 = vmatprep.subr.bf16.mxu0 %v943_v0 }
 0x315   : > { %v924_v6 = vpop.eup %923 }
 0x316   : > { %v535_v7 = vsel %vm247_vm1, %v924_v6, 0.0  ;;  %v539_v8 = vpack.c.bf16 %v924_v6, %v924_v6 }
 0x317   : > { %536 = vadd.xlane.f32.xlu1 %v535_v7 }
 0x318   : > { %884 = vmatmul.mubr.msk.bf16.vlgmr.msra.gmra.mrb[8].mxu0 %vm247_vm1, %v539_v8 }
 0x319   : > { %895 = vmatprep.mubr.msk.bf16.mxu0 %vm944_vm0, %v943_v0 }
 0x333   : > { %v643_v9 = vpop.xlane.xlu1 %642 }
 0x334   : > { %v644_v10 = vsub.f32 %v640_v54, %v643_v9 }
 0x336   : > { %v645_v11 = vmul.f32 1.442695, %v644_v10 }
 0x337   : > { %v653_v12 = vpop.permute.xlu1 %652 }
 0x338   : > { %925 = vpow2.f32 %v645_v11  ;;  %v658_v13 = vsel %vm311_vm3, %v653_v12, 0 }
 0x339   : > { %894 = vmatpush3.bf16.msra.mxu0 %v658_v13 }
 0x342   : > { %v926_v14 = vpop.eup %925 }
 0x343   : > { %v647_v15 = vsel %vm247_vm1, %v926_v14, 0.0  ;;  %v651_v16 = vpack.c.bf16 %v926_v14, %v926_v14 }
 0x344   : > { %648 = vadd.xlane.f32.xlu0 %v647_v15 }
 0x345   : > { %896 = vmatmul.mubr.msk.bf16.vlgmr.msra.gmra.mrb[12].mxu0 %vm247_vm1, %v651_v16 }
 0x348   : > { %304 = vadd.xlane.f32.xlu0 %v303_v17 }
 0x39c   : > { %v422_v0 = vpop.xlane.xlu0 %421 }
 0x39d   : > { %927 = vrcp.f32 %v422_v0 }
 0x3a4   : > { %v537_v18 = vpop.xlane.xlu1 %536 }
 0x3a5   : > { %929 = vrcp.f32 %v537_v18 }
 0x3a7   : > { %v928_v19 = vpop.eup %927 }
 0x3af   : > { %v930_v26 = vpop.eup %929 }
 0x3d1   : > { %v649_v32 = vpop.xlane.xlu0 %648 }
 0x3d2   : > { %931 = vrcp.f32 %v649_v32 }
 0x3d5   : > { %v305_v39 = vpop.xlane.xlu0 %304 }
 0x3d6   : > { %933 = vrcp.f32 %v305_v39 }
 0x3dc   : > { %v932_v33 = vpop.eup %931 }
 0x3e0   : > { %v934_v40 = vpop.eup %933 }
 0x3e1   : > { %v355_v42 = vmul.f32 %v934_v40, %v1048_v30 }
 0x3e3   : > { %v470_v21 = vpop.f32.mrb[4].mxu0 }
 0x3e4   : > { %v476_v22 = vmul.f32 %v928_v19, %v470_v21  ;;  %v873_v23 = vpop.f32.mrb[5].mxu0 }
 0x3e5   : > { %v473_v24 = vpop.f32.mrb[6].mxu0 }
 0x3e6   : > { %702 = vrot.lane.b32.xlu1 %v476_v22, %s948_s6  ;;  %v874_v25 = vpop.f32.mrb[7].mxu0 }
 0x3eb   : > { %v582_v27 = vpop.f32.mrb[8].mxu0 }
 0x3ec   : > { %v588_v28 = vmul.f32 %v930_v26, %v582_v27  ;;  %v885_v29 = vpop.f32.mrb[9].mxu0 }
 0x3ed   : > { %v585_v31 = vpop.f32.mrb[10].mxu0 }
 0x3ee   : > { %706 = vrot.lane.b32.xlu0 %v588_v28, %s949_s7  ;;  %v886_v20 = vpop.f32.mrb[11].mxu0 }
 0x418   : > { %v694_v34 = vpop.f32.mrb[12].mxu0 }
 0x419   : > { %v700_v35 = vmul.f32 %v932_v33, %v694_v34  ;;  %v897_v36 = vpop.f32.mrb[13].mxu0 }
 0x41a   : > { %v697_v37 = vpop.f32.mrb[14].mxu0 }
 0x41b   : > { %710 = vrot.lane.b32.xlu1 %v700_v35, %s950_s8  ;;  %v898_v38 = vpop.f32.mrb[15].mxu0 }
 0x458   : > { %v703_v41 = vpop.permute.xlu1 %702 }
 0x459   : > { %v713_v44 = vsel %vm247_vm1, %v355_v42, %v703_v41 }
 0x460   : > { %v707_v43 = vpop.permute.xlu0 %706 }
 0x461   : > { %v715_v45 = vsel %vm714_vm4, %v713_v44, %v707_v43 }
 0x48d   : > { %v711_v46 = vpop.permute.xlu1 %710 }
 0x48e   : > { %v717_v47 = vsel %vm716_vm5, %v715_v45, %v711_v46 }
 0x48f   : > { %v719_v48 = vsel %vm718_vm6, %v717_v47, 0.0 }
 0x490   : > { %v720_v49 = vpack.c.bf16 %v719_v48, %v719_v48 }
 0x492   : > { %721 = vst [vmem:[%s241_s12] sm:$0xf] %v720_v49 }
 0x493 PF: > { %s14_s15 = sadd.s32 1, %s941_s15  }
 0x494   : > { %p11_p4 = scmp.ge.s32.totalorder %s14_s15, 4  }
 0x496   :  { %13 = sbr.rel (!%p11_p4) target bundleno = 1 (0x1), region = 72 }

// kernel: _lambda_.11
= control target key start
LH: loop header
LB: loop body
LE: loop exit
PB: predicated region body
PF: predicated region fallthrough
CT: control target
= control target key end

     0   :  { %v134_v0 = vmov 0.0   ;;  %vm135_vm0 = vmmov 0   ;;  %vm45_vm1 = vcmask 261120   ;;  %s171_s1 = inlined_call_operand.vmem [shape: bf16[32,128], index: 1, kind: input, shape index: {}]   ;;  %s172_s0 = inlined_call_operand.vmem [shape: bf16[16,32], index: 0, kind: input, shape index: {}]   ;;  %s173_s2 = inlined_call_operand.vmem [shape: f32[1,128], index: 2, kind: input, shape index: {}]   ;;  %s174_s3 = inlined_call_operand.vmem [shape: bf16[16,128], index: 3, kind: output, shape index: {}]  }
   0x1   :  { %121 = vmatprep.subr.bf16.mxu0 %v134_v0  ;;  %v131_v1 = vld [vmem:[%s171_s1] sm:$0xff]   ;;  %125 = vmatprep.mubr.msk.bf16.mxu0 %vm135_vm0, %v134_v0  ;;  %v132_v2 = vld [vmem:[%s171_s1 + $0x8] sm:$0xff]  }
   0x2   :  { %122 = vmatpush3.bf16.msra.mxu0 %v131_v1  ;;  %v133_v3 = vld [vmem:[%s172_s0] sm:$0xff]  }
   0x3   :  { %123 = vmatprep.subr.bf16.mxu0 %v134_v0  ;;  %v104_v4 = vld [vmem:[%s173_s2] ss:$0 sm:$0xff] }
   0x6   :  { %124 = vmatpush3.bf16.msra.mxu0 %v132_v2 }
   0x9   :  { %126 = vmatmul.mubr.msk.bf16.vlgmr.msra.gmra.mrb[0].mxu0 %vm45_vm1, %v133_v3 }
  0xdc   :  { %v83_v5 = vpop.f32.mrb[0].mxu0 }
  0xdd   :  { %v127_v6 = vpop.f32.mrb[1].mxu0  ;;  %v84_v8 = vadd.f32 %v104_v4, %v83_v5 }
  0xde   :  { %v86_v7 = vpop.f32.mrb[2].mxu0 }
  0xdf   :  { %v87_v9 = vadd.f32 %v104_v4, %v86_v7  ;;  %v128_v10 = vpop.f32.mrb[3].mxu0 }
  0xe1   :  { %v116_v11 = vpack.c.bf16 %v87_v9, %v84_v8 }
  0xe3   :  { %117 = vst [vmem:[%s174_s3] sm:$0xff] %v116_v11  }

// kernel: _lambda_.10
= control target key start
LH: loop header
LB: loop body
LE: loop exit
PB: predicated region body
PF: predicated region fallthrough
CT: control target
= control target key end

     0   :  { %v275_v0 = vmov 0.0   ;;  %vm276_vm0 = vmmov 0   ;;  %vm148_vm1 = vcmask 261120   ;;  %s366_s1 = inlined_call_operand.vmem [shape: bf16[128,32], index: 1, kind: input, shape index: {}]   ;;  %s367_s0 = inlined_call_operand.vmem [shape: bf16[16,128], index: 0, kind: input, shape index: {}]   ;;  %s368_s2 = inlined_call_operand.vmem [shape: f32[1,32], index: 2, kind: input, shape index: {}]   ;;  %s369_s3 = inlined_call_operand.vmem [shape: f32[16,32], index: 3, kind: input, shape index: {}]   ;;  %s370_s4 = inlined_call_operand.vmem [shape: f32[1,32], index: 4, kind: input, shape index: {}]   ;;  %s371_s5 = inlined_call_operand.vmem [shape: f32[1,32], index: 5, kind: input, shape index: {}]   ;;  %s372_s6 = inlined_call_operand.vmem [shape: f32[16,32], index: 6, kind: output, shape index: {}]  }
   0x1   :  { %236 = vmatprep.subr.bf16.mxu0 %v275_v0  ;;  %v258_v1 = vld [vmem:[%s366_s1] sm:$0xff]   ;;  %252 = vmatprep.mubr.msk.bf16.mxu0 %vm276_vm0, %v275_v0  ;;  %v259_v2 = vld [vmem:[%s366_s1 + $0x8] sm:$0xff]   ;;  %v260_v3 = vld [vmem:[%s366_s1 + $0x10] sm:$0xff]  }
   0x2   :  { %237 = vmatpush3.bf16.msra.mxu0 %v258_v1  ;;  %v261_v4 = vld [vmem:[%s366_s1 + $0x18] sm:$0xff]   ;;  %v262_v5 = vld [vmem:[%s366_s1 + $0x20] sm:$0xff]   ;;  %v263_v6 = vld [vmem:[%s366_s1 + $0x28] sm:$0xff]  }
   0x3   :  { %238 = vmatprep.subr.bf16.mxu0 %v275_v0  ;;  %v264_v7 = vld [vmem:[%s366_s1 + $0x30] sm:$0xff]   ;;  %v265_v8 = vld [vmem:[%s366_s1 + $0x38] sm:$0xff]   ;;  %v266_v9 = vld [vmem:[%s367_s0] sm:$0xff]  }
   0x4   :  { %v215_v10 = vld [vmem:[%s368_s2] ss:$0 sm:$0xff]  ;;  %v145_v16 = vld [vmem:[%s369_s3 + $0x8] sm:$0xff] }
   0x5   :  { %v144_v12 = vld [vmem:[%s369_s3] sm:$0xff] }
   0x6   :  { %239 = vmatpush3.bf16.msra.mxu0 %v259_v2  ;;  %v225_v49 = vld [vmem:[%s370_s4] ss:$0 sm:$0xff] }
   0x7   :  { %240 = vmatprep.subr.bf16.mxu0 %v275_v0  ;;  %v226_v52 = vld [vmem:[%s371_s5] ss:$0 sm:$0xff] }
   0xa   :  { %241 = vmatpush3.bf16.msra.mxu0 %v260_v3 }
   0xb   :  { %242 = vmatprep.subr.bf16.mxu0 %v275_v0 }
   0xe   :  { %243 = vmatpush3.bf16.msra.mxu0 %v261_v4 }
   0xf   :  { %244 = vmatprep.subr.bf16.mxu0 %v275_v0 }
  0x12   :  { %245 = vmatpush3.bf16.msra.mxu0 %v262_v5 }
  0x13   :  { %246 = vmatprep.subr.bf16.mxu0 %v275_v0 }
  0x16   :  { %247 = vmatpush3.bf16.msra.mxu0 %v263_v6 }
  0x17   :  { %248 = vmatprep.subr.bf16.mxu0 %v275_v0 }
  0x1a   :  { %249 = vmatpush3.bf16.msra.mxu0 %v264_v7 }
  0x1b   :  { %250 = vmatprep.subr.bf16.mxu0 %v275_v0 }
  0x1e   :  { %251 = vmatpush3.bf16.msra.mxu0 %v265_v8 }
  0x21   :  { %253 = vmatmul.mubr.bf16.vlgmr.msra.gmra.mrb[0].mxu0 %v266_v9 }
  0xf4   :  { %v137_v11 = vpop.f32.mrb[0].mxu0 }
  0xf5   :  { %v138_v13 = vadd.f32 %v215_v10, %v137_v11  ;;  %v254_v14 = vpop.f32.mrb[1].mxu0 }
  0xf6   :  { %v140_v15 = vpop.f32.mrb[2].mxu0 }
  0xf7   :  { %v141_v17 = vadd.f32 %v215_v10, %v140_v15  ;;  %v255_v18 = vpop.f32.mrb[3].mxu0  ;;  %v146_v19 = vadd.f32 %v144_v12, %v138_v13 }
  0xf9   :  { %v149_v20 = vsel %vm148_vm1, %v146_v19, 0.0  ;;  %v147_v21 = vadd.f32 %v145_v16, %v141_v17 }
  0xfa   :  { %150 = vadd.xlane.f32.xlu0 %v149_v20 }
  0xfb   :  { %v152_v22 = vsel %vm148_vm1, %v147_v21, 0.0 }
  0xfe   :  { %153 = vadd.xlane.f32.xlu0 %v152_v22 }
 0x187   :  { %v151_v23 = vpop.xlane.xlu0 %150 }
 0x188   :  { %v156_v24 = vmul.f32 0.03125, %v151_v23 }
 0x18a   :  { %v158_v25 = vsub.f32 %v146_v19, %v156_v24 }
 0x18b   :  { %v154_v26 = vpop.xlane.xlu0 %153 }
 0x18c   :  { %v157_v27 = vmul.f32 0.03125, %v154_v26  ;;  %v160_v28 = vmul.f32 %v158_v25, %v158_v25  ;;  %v192_v50 = vmul.f32 %v225_v49, %v158_v25 }
 0x18e   :  { %v159_v29 = vsub.f32 %v147_v21, %v157_v27  ;;  %v162_v30 = vsel %vm148_vm1, %v160_v28, 0.0 }
 0x18f   :  { %163 = vadd.xlane.f32.xlu1 %v162_v30 }
 0x190   :  { %v161_v31 = vmul.f32 %v159_v29, %v159_v29  ;;  %v193_v54 = vmul.f32 %v225_v49, %v159_v29 }
 0x192   :  { %v165_v32 = vsel %vm148_vm1, %v161_v31, 0.0 }
 0x193   :  { %166 = vadd.xlane.f32.xlu1 %v165_v32 }
 0x21c   :  { %v164_v33 = vpop.xlane.xlu1 %163 }
 0x21d   :  { %v169_v34 = vmul.f32 0.032258064, %v164_v33 }
 0x21f   :  { %267 = vrsqrt.f32 %v169_v34  ;;  %vm173_vm2 = vcmp.eq.f32.partialorder %v169_v34, inf  ;;  %v176_v39 = vand.u32 2147483648, %v169_v34  ;;  %vm175_vm3 = vcmp.eq.f32.partialorder %v169_v34, 0.0 }
 0x220   :  { %v167_v35 = vpop.xlane.xlu1 %166 }
 0x221   :  { %v170_v36 = vmul.f32 0.032258064, %v167_v35 }
 0x223   :  { %269 = vrsqrt.f32 %v170_v36  ;;  %vm180_vm4 = vcmp.eq.f32.partialorder %v170_v36, inf  ;;  %v183_v45 = vand.u32 2147483648, %v170_v36  ;;  %vm182_vm5 = vcmp.eq.f32.partialorder %v170_v36, 0.0 }
 0x229   :  { %v268_v37 = vpop.eup %267 }
 0x22a   :  { %v172_v38 = vmul.f32 %v268_v37, %v169_v34 }
 0x22c   :  { %v174_v40 = vsel %vm173_vm2, %v169_v34, %v172_v38 }
 0x22d   :  { %v270_v41 = vpop.eup %269  ;;  %v177_v42 = vsel %vm175_vm3, %v176_v39, %v174_v40 }
 0x22e   :  { %v194_v43 = vadd.f32 1e-06, %v177_v42  ;;  %v179_v44 = vmul.f32 %v270_v41, %v170_v36 }
 0x230   :  { %271 = vrcp.f32 %v194_v43  ;;  %v181_v46 = vsel %vm180_vm4, %v170_v36, %v179_v44 }
 0x231   :  { %v184_v47 = vsel %vm182_vm5, %v183_v45, %v181_v46 }
 0x232   :  { %v195_v48 = vadd.f32 1e-06, %v184_v47 }
 0x234   :  { %273 = vrcp.f32 %v195_v48 }
 0x23a   :  { %v272_v51 = vpop.eup %271 }
 0x23b   :  { %v197_v53 = vmul.f32 %v272_v51, %v192_v50 }
 0x23d   :  { %v207_v55 = vadd.f32 %v226_v52, %v197_v53 }
 0x23e   :  { %v274_v56 = vpop.eup %273 }
 0x23f   :  { %209 = vst.msk [vmem:[%s372_s6] sm:$0xff] %vm148_vm1, %v207_v55  ;;  %v199_v57 = vmul.f32 %v274_v56, %v193_v54 }
 0x241   :  { %v208_v58 = vadd.f32 %v226_v52, %v199_v57 }
 0x243   :  { %210 = vst.msk [vmem:[%s372_s6 + $0x8] sm:$0xff] %vm148_vm1, %v208_v58 }

// kernel: _lambda_.12
= control target key start
LH: loop header
LB: loop body
LE: loop exit
PB: predicated region body
PF: predicated region fallthrough
CT: control target
= control target key end

     0   :  { %v186_v1 = vmov 0   ;;  %vm65_vm0 = vcmask 261120   ;;  %v25_v7 = vlaneseq  ;;  %s240_s1 = inlined_call_operand.vmem [shape: bf16[32,256], index: 1, kind: input, shape index: {}]   ;;  %s241_s0 = inlined_call_operand.vmem [shape: bf16[32,32], index: 0, kind: input, shape index: {}]   ;;  %s242_s2 = inlined_call_operand.vmem [shape: f32[1,256], index: 2, kind: input, shape index: {}]   ;;  %s243_s3 = inlined_call_operand.vmem [shape: bf16[32,256], index: 3, kind: output, shape index: {}]  }
   0x1   :  { %v178_v0 = vld [vmem:[%s240_s1 + $0x4] ss:$8 sps:$4 sm:$0xff]   ;;  %104 = vmatprep.mubr.bf16.mxu0 %v186_v1  ;;  %114 = vmatprep.mubr.bf16.mxu1 %v186_v1  ;;  %v180_v2 = vld [vmem:[%s240_s1] ss:$8 sps:$4 sm:$0xff]   ;;  %v181_v3 = vld [vmem:[%s240_s1 + $0x14] ss:$8 sps:$4 sm:$0xff]  }
   0x2   :  { %72 = vmatprep.subr.bf16.mxu0 %v178_v0  ;;  %173 = vmatprep.subr.bf16.mxu1 %v178_v0  ;;  %v183_v4 = vld [vmem:[%s240_s1 + $0x10] ss:$8 sps:$4 sm:$0xff]   ;;  %v184_v5 = vld [vmem:[%s241_s0] sm:$0xff]   ;;  %v185_v6 = vld [vmem:[%s241_s0 + $0x8] sm:$0xff]   ;;  %v26_v8 = vshrl.u32 %v25_v7, 7 }
   0x3   :  { %73 = vmatpush1.bf16.msra.mxu0 %v180_v2  ;;  %175 = vmatpush1.bf16.msra.mxu1 %v180_v2  ;;  %v23_v10 = vld [vmem:[%s242_s2] sm:$0x3] }
   0x4   :  { %74 = vmatprep.subr.bf16.mxu0 %v181_v3  ;;  %174 = vmatprep.subr.bf16.mxu1 %v181_v3  ;;  %v27_v9 = vsub.s32 0, %v26_v8  ;;  %v31_v11 = vsub.s32 1, %v26_v8 }
   0x6   :  { %v28_v12 = vrot.slane %v23_v10, %v27_v9  ;;  %v32_v13 = vrot.slane %v23_v10, %v31_v11 }
   0x7   :  { %75 = vmatpush1.bf16.msra.mxu0 %v183_v4  ;;  %176 = vmatpush1.bf16.msra.mxu1 %v183_v4 }
   0xa   :  { %163 = vmatmul.mubr.msk.bf16.vlgmr.msra.gmra.mrb[0].mxu0 %vm65_vm0, %v184_v5  ;;  %164 = vmatmul.mubr.msk.bf16.vlgmr.msra.gmra.mrb[0].mxu1 %vm65_vm0, %v185_v6 }
  0xdd   :  { %v106_v14 = vpop.f32.mrb[0].mxu0  ;;  %v116_v15 = vpop.f32.mrb[0].mxu1 }
  0xde   :  { %v107_v16 = vadd.f32 %v106_v14, %v28_v12  ;;  %v117_v17 = vadd.f32 %v116_v15, %v28_v12  ;;  %v108_v18 = vpop.f32.mrb[1].mxu0  ;;  %v118_v19 = vpop.f32.mrb[1].mxu1 }
  0xdf   :  { %v109_v20 = vadd.f32 %v108_v18, %v32_v13  ;;  %v119_v21 = vadd.f32 %v118_v19, %v32_v13  ;;  %v110_v22 = vpop.f32.mrb[2].mxu0  ;;  %v120_v23 = vpop.f32.mrb[2].mxu1 }
  0xe0   :  { %v111_v24 = vadd.f32 %v110_v22, %v28_v12  ;;  %v121_v25 = vadd.f32 %v120_v23, %v28_v12  ;;  %v112_v26 = vpop.f32.mrb[3].mxu0  ;;  %v122_v27 = vpop.f32.mrb[3].mxu1 }
  0xe1   :  { %v169_v28 = vpack.c.bf16 %v109_v20, %v107_v16  ;;  %v171_v29 = vpack.c.bf16 %v119_v21, %v117_v17  ;;  %v113_v30 = vadd.f32 %v112_v26, %v32_v13  ;;  %v123_v31 = vadd.f32 %v122_v27, %v32_v13 }
  0xe3   :  { %149 = vst [vmem:[%s243_s3] sm:$0xff] %v169_v28  ;;  %151 = vst [vmem:[%s243_s3 + $0x10] sm:$0xff] %v171_v29  ;;  %v170_v32 = vpack.c.bf16 %v113_v30, %v111_v24  ;;  %v172_v33 = vpack.c.bf16 %v123_v31, %v121_v25 }
  0xe5   :  { %150 = vst [vmem:[%s243_s3 + $0x8] sm:$0xff] %v170_v32  ;;  %152 = vst [vmem:[%s243_s3 + $0x18] sm:$0xff] %v172_v33 }

// kernel: _lambda_.15
= control target key start
LH: loop header
LB: loop body
LE: loop exit
PB: predicated region body
PF: predicated region fallthrough
CT: control target
= control target key end

     0   :  { %v418_v1 = vmov 0.0   ;;  %vm419_vm0 = vmmov 0   ;;  %vm32_vm1 = vcmask 261120   ;;  %s534_s0 = inlined_call_operand.vmem [shape: f32[16,32], index: 0, kind: input, shape index: {}]   ;;  %s535_s1 = inlined_call_operand.vmem [shape: bf16[32,128], index: 1, kind: input, shape index: {}]   ;;  %s536_s2 = inlined_call_operand.vmem [shape: f32[1,128], index: 2, kind: input, shape index: {}]   ;;  %s537_s3 = inlined_call_operand.vmem [shape: bf16[128,32], index: 3, kind: input, shape index: {}]   ;;  %s538_s4 = inlined_call_operand.vmem [shape: f32[1,32], index: 4, kind: input, shape index: {}]   ;;  %s539_s5 = inlined_call_operand.vmem [shape: f32[1,32], index: 5, kind: input, shape index: {}]   ;;  %s540_s6 = inlined_call_operand.vmem [shape: f32[1,32], index: 6, kind: input, shape index: {}]   ;;  %s541_s7 = inlined_call_operand.hbm [shape: f32[16,32], index: 7, kind: output, shape index: {}]  }
   0x1   :  { %v376_v0 = vld [vmem:[%s535_s1] sm:$0xff]   ;;  %343 = vmatprep.subr.bf16.mxu0 %v418_v1  ;;  %v377_v2 = vld [vmem:[%s535_s1 + $0x8] sm:$0xff]   ;;  %351 = vmatprep.subr.bf16.mxu1 %v418_v1  ;;  %33 = vst.msk [vmem:[#allocation2] sm:$0xff] %vm32_vm1, %v418_v1  ;;  %34 = vst.msk [vmem:[#allocation2 + $0x8] sm:$0xff] %vm32_vm1, %v418_v1 }
   0x2   :  { %344 = vmatpush3.bf16.msra.mxu0 %v376_v0  ;;  %347 = vmatprep.mubr.msk.bf16.mxu0 %vm419_vm0, %v418_v1  ;;  %v35_v3 = vld [vmem:[%s534_s0] sm:$0xff]  ;;  %v36_v4 = vld [vmem:[%s534_s0 + $0x8] sm:$0xff]  ;;  %v380_v8 = vld [vmem:[%s537_s3 + $0x10] sm:$0xff]  }
   0x3   :  { %345 = vmatprep.subr.bf16.mxu0 %v418_v1  ;;  %v378_v5 = vld [vmem:[%s537_s3] sm:$0xff]   ;;  %367 = vmatprep.mubr.msk.bf16.mxu1 %vm419_vm0, %v418_v1  ;;  %v37_v6 = vpack.c.bf16 %v36_v4, %v35_v3  ;;  %v379_v7 = vld [vmem:[%s537_s3 + $0x8] sm:$0xff]  }
   0x4   :  { %352 = vmatpush3.bf16.msra.mxu1 %v378_v5 }
   0x5   :  { %353 = vmatprep.subr.bf16.mxu1 %v418_v1 }
   0x6   :  { %346 = vmatpush3.bf16.msra.mxu0 %v377_v2 }
   0x8   :  { %354 = vmatpush3.bf16.msra.mxu1 %v379_v7 }
   0x9   :  { %348 = vmatmul.mubr.msk.bf16.vlgmr.msra.gmra.mrb[0].mxu0 %vm32_vm1, %v37_v6  ;;  %355 = vmatprep.subr.bf16.mxu1 %v418_v1 }
   0xa   :  { %12 = vsyncpa [#allocation4], 0  ;;  %v381_v9 = vld [vmem:[%s537_s3 + $0x18] sm:$0xff]   ;;  %v382_v10 = vld [vmem:[%s537_s3 + $0x20] sm:$0xff]   ;;  %s420_s28 = smov [#allocation3]  }
   0xb   :  { %v383_v11 = vld [vmem:[%s537_s3 + $0x28] sm:$0xff]   ;;  %v384_v12 = vld [vmem:[%s537_s3 + $0x30] sm:$0xff]   ;;  %v385_v13 = vld [vmem:[%s537_s3 + $0x38] sm:$0xff]   ;;  %s305_s29 = sshll.u32 %s420_s28, 4  ;;  %s306_s29 = int_to_ptr.vmem [resolvable:$true] %s305_s29 }
   0xc   :  { %356 = vmatpush3.bf16.msra.mxu1 %v380_v8  ;;  %v316_v14 = vld [vmem:[%s536_s2] ss:$0 sm:$0xff]  ;;  %v109_v26 = vld [vmem:[#allocation2 + $0x8] sm:$0xff]  ;;  %p399_p1 = scmp.lt.s32.totalorder %s306_s29, %s306_s29 }
   0xd   :  { %357 = vmatprep.subr.bf16.mxu1 %v418_v1  ;;  %v108_v24 = vld [vmem:[#allocation2] sm:$0xff] }
   0xe   :  { %v328_v32 = vld [vmem:[%s538_s4] ss:$0 sm:$0xff] }
   0xf   :  { %v330_v6 = vld [vmem:[%s540_s6] ss:$0 sm:$0xff] }
  0x10   :  { %358 = vmatpush3.bf16.msra.mxu1 %v381_v9 }
  0x11   :  { %359 = vmatprep.subr.bf16.mxu1 %v418_v1 }
  0x14   :  { %360 = vmatpush3.bf16.msra.mxu1 %v382_v10 }
  0x15   :  { %361 = vmatprep.subr.bf16.mxu1 %v418_v1 }
  0x18   :  { %362 = vmatpush3.bf16.msra.mxu1 %v383_v11 }
  0x19   :  { %363 = vmatprep.subr.bf16.mxu1 %v418_v1 }
  0x1c   :  { %364 = vmatpush3.bf16.msra.mxu1 %v384_v12 }
  0x1d   :  { %365 = vmatprep.subr.bf16.mxu1 %v418_v1 }
  0x20   :  { %366 = vmatpush3.bf16.msra.mxu1 %v385_v13 }
  0xdc   :  { %v99_v15 = vpop.f32.mrb[0].mxu0 }
  0xdd   :  { %v100_v16 = vadd.f32 %v316_v14, %v99_v15  ;;  %v349_v17 = vpop.f32.mrb[1].mxu0 }
  0xde   :  { %v102_v18 = vpop.f32.mrb[2].mxu0 }
  0xdf   :  { %v103_v19 = vadd.f32 %v316_v14, %v102_v18  ;;  %v350_v20 = vpop.f32.mrb[3].mxu0  ;;  %v106_v21 = vmax.f32 %v100_v16, 0.0 }
  0xe1   :  { %v107_v22 = vmax.f32 %v103_v19, 0.0 }
  0xe3   :  { %v110_v23 = vpack.c.bf16 %v107_v22, %v106_v21 }
  0xe5   :  { %368 = vmatmul.mubr.bf16.vlgmr.msra.gmra.mrb[0].mxu1 %v110_v23 }
 0x1b8   :  { %v209_v25 = vpop.f32.mrb[0].mxu1 }
 0x1b9   :  { %v216_v27 = vadd.f32 %v209_v25, %v108_v24  ;;  %v369_v28 = vpop.f32.mrb[1].mxu1 }
 0x1ba   :  { %v212_v29 = vpop.f32.mrb[2].mxu1 }
 0x1bb   :  { %218 = vst.msk [vmem:[#allocation2] sm:$0xff] %vm32_vm1, %v216_v27  ;;  %v217_v30 = vadd.f32 %v212_v29, %v109_v26  ;;  %v370_v31 = vpop.f32.mrb[3].mxu1 }
 0x1bd   :  { %219 = vst.msk [vmem:[#allocation2 + $0x8] sm:$0xff] %vm32_vm1, %v217_v30 }
 0x1c2   :  { %v225_v33 = vld [vmem:[#allocation2] sm:$0xff] }
 0x1c3   :  { %v234_v34 = vadd.f32 %v328_v32, %v225_v33 }
 0x1c4   :  { %v226_v35 = vld [vmem:[#allocation2 + $0x8] sm:$0xff] }
 0x1c5   :  { %v236_v36 = vadd.f32 %v234_v34, %v35_v3  ;;  %v235_v37 = vadd.f32 %v328_v32, %v226_v35  ;;  %v329_v3 = vld [vmem:[%s539_s5] ss:$0 sm:$0xff]  ;;  %s394_s5 = scalar_lea.vmem %s306_s29, 256 }
 0x1c6   :  { %p395_p0 = scmp.ne.s32.totalorder %s306_s29, %s394_s5  ;;  %p400_p2 = scmp.lt.s32.totalorder %s394_s5, %s394_s5 }
 0x1c7   :  { %v238_v38 = vsel %vm32_vm1, %v236_v36, 0.0  ;;  %v237_v39 = vadd.f32 %v235_v37, %v36_v4 }
 0x1c8   :  { %239 = vadd.xlane.f32.xlu0 %v238_v38  ;;  %p401_p3 = por %p400_p2, %p399_p1 }
 0x1c9   :  { %v241_v40 = vsel %vm32_vm1, %v237_v39, 0.0 }
 0x1ca   :  { %p402_p4 = pnand %p401_p3, %p395_p0 }
 0x1cc   :  { %242 = vadd.xlane.f32.xlu0 %v241_v40 }
 0x255   :  { %v240_v41 = vpop.xlane.xlu0 %239 }
 0x256   :  { %v245_v42 = vmul.f32 0.03125, %v240_v41 }
 0x258   :  { %v247_v43 = vsub.f32 %v236_v36, %v245_v42 }
 0x259   :  { %v243_v44 = vpop.xlane.xlu0 %242 }
 0x25a   :  { %v246_v45 = vmul.f32 0.03125, %v243_v44  ;;  %v249_v46 = vmul.f32 %v247_v43, %v247_v43  ;;  %v281_v4 = vmul.f32 %v329_v3, %v247_v43 }
 0x25c   :  { %v248_v47 = vsub.f32 %v237_v39, %v246_v45  ;;  %v251_v48 = vsel %vm32_vm1, %v249_v46, 0.0 }
 0x25d   :  { %252 = vadd.xlane.f32.xlu1 %v251_v48 }
 0x25e   :  { %v250_v49 = vmul.f32 %v248_v47, %v248_v47  ;;  %v282_v8 = vmul.f32 %v329_v3, %v248_v47 }
 0x260   :  { %v254_v50 = vsel %vm32_vm1, %v250_v49, 0.0 }
 0x261   :  { %255 = vadd.xlane.f32.xlu1 %v254_v50 }
 0x2ea   :  { %v253_v51 = vpop.xlane.xlu1 %252 }
 0x2eb   :  { %v258_v52 = vmul.f32 0.032258064, %v253_v51 }
 0x2ed   :  { %386 = vrsqrt.f32 %v258_v52  ;;  %vm262_vm2 = vcmp.eq.f32.partialorder %v258_v52, inf  ;;  %v265_v57 = vand.u32 2147483648, %v258_v52  ;;  %vm264_vm3 = vcmp.eq.f32.partialorder %v258_v52, 0.0 }
 0x2ee   :  { %v256_v53 = vpop.xlane.xlu1 %255 }
 0x2ef   :  { %v259_v54 = vmul.f32 0.032258064, %v256_v53 }
 0x2f1   :  { %388 = vrsqrt.f32 %v259_v54  ;;  %vm269_vm4 = vcmp.eq.f32.partialorder %v259_v54, inf  ;;  %v272_v63 = vand.u32 2147483648, %v259_v54  ;;  %vm271_vm5 = vcmp.eq.f32.partialorder %v259_v54, 0.0 }
 0x2f7   :  { %v387_v55 = vpop.eup %386 }
 0x2f8   :  { %v261_v56 = vmul.f32 %v387_v55, %v258_v52 }
 0x2fa   :  { %v263_v58 = vsel %vm262_vm2, %v258_v52, %v261_v56 }
 0x2fb   :  { %v389_v59 = vpop.eup %388  ;;  %v266_v60 = vsel %vm264_vm3, %v265_v57, %v263_v58 }
 0x2fc   :  { %v283_v61 = vadd.f32 1e-06, %v266_v60  ;;  %v268_v62 = vmul.f32 %v389_v59, %v259_v54 }
 0x2fe   :  { %390 = vrcp.f32 %v283_v61  ;;  %v270_v0 = vsel %vm269_vm4, %v259_v54, %v268_v62 }
 0x2ff   :  { %v273_v1 = vsel %vm271_vm5, %v272_v63, %v270_v0 }
 0x300   :  { %v284_v2 = vadd.f32 1e-06, %v273_v1 }
 0x302   :  { %392 = vrcp.f32 %v284_v2 }
 0x308   :  { %v391_v5 = vpop.eup %390 }
 0x309   :  { %v286_v7 = vmul.f32 %v391_v5, %v281_v4 }
 0x30b   :  { %v296_v9 = vadd.f32 %v330_v6, %v286_v7 }
 0x30c   :  { %v393_v10 = vpop.eup %392 }
 0x30d   :  { %v288_v11 = vmul.f32 %v393_v10, %v282_v8  ;;  %298 = vst.msk [vmem:[#allocation3] sm:$0xff] %vm32_vm1, %v296_v9 }
 0x30f   :  { %v297_v12 = vadd.f32 %v330_v6, %v288_v11 }
 0x311   :  { %299 = vst.msk [vmem:[#allocation3 + $0x8] sm:$0xff] %vm32_vm1, %v297_v12 }
 0x312   :  { %405 = shalt.err (!%p402_p4)
}
 0x313   :  { %s406_s8 = scalar_lea.hbm %s541_s7, 256 }
 0x314   :  { %p407_p5 = scmp.ne.s32.totalorder %s541_s7, %s406_s8  ;;  %p410_p6 = scmp.lt.u32.totalorder %s406_s8, %s541_s7 }
 0x316   :  { %p412_p7 = pnand %p410_p6, %p407_p5 }
 0x318   :  { %415 = shalt.err (!%p412_p7)
}
 0x319   :  { %s421_s12 = smov 128   ;;  %s422_s0 = smov 8  }
 0x31a   :  { %311 = dma.vmem_to_hbm [thread:$0]  %s306_s29, 256, %s541_s7, [#allocation4], %s421_s12, %s421_s12, %s422_s0  }
 0x31b   :  { %416 = dma.done.wait [#allocation4], 256  }
 0x31c   :  { %417 = vsyncadd [#allocation4], 4294967040 }
 0x31d   :  { %315 = vsyncpa [#allocation4], 1 }

// kernel: _lambda_.13
= control target key start
LH: loop header
LB: loop body
LE: loop exit
PB: predicated region body
PF: predicated region fallthrough
CT: control target
= control target key end

     0   :  { %s1129_s15 = smov 0   ;;  %s1131_s16 = smov 0   ;;  %s1288_s0 = inlined_call_operand.vmem [shape: bf16[2,8,128], index: 0, kind: input, shape index: {}]   ;;  %s1289_s1 = inlined_call_operand.vmem [shape: bf16[2,16,256], index: 1, kind: input, shape index: {}, may-alias: {1,2}]   ;;  %s1290_s2 = inlined_call_operand.vmem [shape: bf16[2,16,256], index: 2, kind: input, shape index: {}, may-alias: {1,2}]   ;;  %s1291_s3 = inlined_call_operand.vmem [shape: f32[2,1,16], index: 3, kind: input, shape index: {}]   ;;  %s1292_s4 = inlined_call_operand.vmem [shape: bf16[2,8,128], index: 4, kind: output, shape index: {}]  }
   0x1   :  { %s1133_s17 = smov 0  }
   0x2 LB: > { %s923_s18 = sadd.s32 4294967295, %s1093_s17   ;;  %s1146_s19 = sadd.s32 1, %s1093_s17   ;;  %s1093_s17 = sphi %s1133_s17, %s1296_s17   ;;  %s1089_s16 = sphi %s1131_s16, %s1295_s16   ;;  %s1085_s15 = sphi %s1129_s15, %s1294_s15  }
   0x3   : > { %s44_s20 = ssub.s32 %s1093_s17, %s1146_s19  ;;  %s47_s21 = sadd.s32 1, %s1089_s16 }
   0x4   : > { %p45_p0 = scmp.eq.s32.totalorder %s44_s20, 0  ;;  %p54_p1 = scmp.ne.s32.totalorder %s1089_s16, %s1085_s15 }
   0x5   : > { %p55_p2 = scmp.eq.s32.totalorder %s1093_s17, 0  ;;  %p926_p4 = scmp.ge.s32.totalorder %s1093_s17, 2 }
   0x6   : > { %s1155_s22 = scalar_select %p45_p0, %s1089_s16, %s47_s21  }
   0x7   : > { %p1157_p3 = por %p55_p2, %p54_p1  ;;  %158 = sbr.rel (%p926_p4) target bundleno = 28 (0x1c), region = 16 }
   0xe   : > { %168 = sbr.rel (!%p1157_p3) target bundleno = 21 (0x15), region = 24  ;;  %s170_s24 = sand.u32 (%p1157_p3), 1, %s1089_s16  }
   0xf   : > { %s953_s25 = sshll.u32 (%p1157_p3), %s1093_s17, 4  ;;  %s927_s26 = sshll.u32 (%p1157_p3), %s170_s24, 3 }
  0x10   : > { %s175_s29 = scalar_lea.vmem (%p1157_p3), %s1289_s1, %s953_s25  ;;  %s172_s30 = scalar_lea.vmem (%p1157_p3), [#allocation2], %s927_s26 }
  0x11   : > { %v191_v0 = vld [vmem:[%s175_s29] sm:$0xf] (%p1157_p3)  ;;  %v193_v1 = vld [vmem:[%s175_s29 + $0x8] sm:$0xf] (%p1157_p3) }
  0x12   : > { %192 = vst [vmem:[%s172_s30] sm:$0xf] (%p1157_p3), %v191_v0  ;;  %194 = vst [vmem:[%s172_s30 + $0x4] sm:$0xf] (%p1157_p3), %v193_v1 }
  0x15 PF: > { %221 = sbr.rel (!%p1157_p3) target bundleno = 28 (0x1c), region = 65  ;;  %s223_s5 = sand.u32 (%p1157_p3), 1, %s1089_s16  }
  0x16   : > { %s954_s6 = sshll.u32 (%p1157_p3), %s1093_s17, 4  ;;  %s930_s7 = sshll.u32 (%p1157_p3), %s223_s5, 3 }
  0x17   : > { %s852_s10 = scalar_lea.vmem (%p1157_p3), %s1290_s2, %s954_s6  ;;  %s225_s11 = scalar_lea.vmem (%p1157_p3), [#allocation3], %s930_s7 }
  0x18   : > { %v933_v2 = vld [vmem:[%s852_s10 + $0x4] sm:$0xf] (%p1157_p3)  ;;  %v934_v3 = vld [vmem:[%s852_s10 + $0xc] sm:$0xf] (%p1157_p3) }
  0x19   : > { %246 = vst [vmem:[%s225_s11] sm:$0xf] (%p1157_p3), %v933_v2  ;;  %248 = vst [vmem:[%s225_s11 + $0x4] sm:$0xf] (%p1157_p3), %v934_v3 }
  0x1c PF: > { %p935_p5 = scmp.ge.s32.totalorder %s1093_s17, 1  ;;  %p280_p6 = scmp.lt.s32.totalorder %s1093_s17, 3 }
  0x1e   : > { %p281_p7 = pnand %p935_p5, %p280_p6 }
  0x1f   : > { %s287_s12 = sand.u32 (!%p281_p7), 1, %s1085_s15   ;;  %p329_p8 = scmp.lt.s32.totalorder (!%p281_p7), %s923_s18, 1  ;;  %v1095_v4 = vmov (!%p281_p7), 0.0   ;;  %vm1096_vm0 = vmmov (!%p281_p7), 0   ;;  %vm352_vm1 = vcmask (!%p281_p7), 64512   ;;  %v402_v9 = vlaneseq (!%p281_p7) }
  0x20   : > { %284 = sbr.rel (%p281_p7) target bundleno = 1188 (0x4a4), region = 110  ;;  %971 = vmatprep.subr.bf16.mxu0 (!%p281_p7), %v1095_v4  ;;  %s1182_s13 = sshll.u32 (!%p281_p7), %s287_s12, 3  ;;  %973 = vmatprep.mubr.msk.bf16.mxu0 (!%p281_p7), %vm1096_vm0, %v1095_v4  ;;  %v1100_v13 = vmov (!%p281_p7), 0   ;;  %vm408_vm4 = vcmask (!%p281_p7), 130048   ;;  %vm817_vm5 = vcmask (!%p281_p7), 195584   ;;  %vm819_vm6 = vcmask (!%p281_p7), 261120  }
  0x21   : > { %977 = vmatprep.subr.bf16.mxu1 (!%p281_p7), %v1095_v4  ;;  %979 = vmatprep.mubr.msk.bf16.mxu1 (!%p281_p7), %vm1096_vm0, %v1095_v4  ;;  %s289_s14 = scalar_lea.vmem (!%p281_p7), [#allocation2], %s1182_s13  ;;  %s1097_s17 = smov (!%p281_p7), 120   ;;  %v403_v11 = vshrl.u32 (!%p281_p7), %v402_v9, 7 }
  0x22   : > { %v1052_v5 = vld [vmem:[%s289_s14] sm:$0xff] (!%p281_p7)   ;;  %s1098_s24 = smov (!%p281_p7), 112   ;;  %s1099_s25 = smov (!%p281_p7), 104  }
  0x23   : > { %v357_v6 = vsel (!%p281_p7), %vm352_vm1, %v1052_v5, 0  ;;  %v404_v12 = vsub.s32 (!%p281_p7), 0, %v403_v11  ;;  %s296_s29 = scalar_lea.vmem (!%p281_p7), [#allocation3], %s1182_s13  ;;  %s1101_s30 = smov (!%p281_p7), 8  }
  0x24   : > { %972 = vmatpush3.bf16.xpose.msra.mxu0 (!%p281_p7), %v357_v6  ;;  %v1054_v23 = vld [vmem:[%s296_s29] sm:$0xff] (!%p281_p7)   ;;  %s1102_s5 = smov (!%p281_p7), 16   ;;  %s1103_s6 = smov (!%p281_p7), 24  }
  0x25   : > { %989 = vmatprep.subr.bf16.mxu0 (!%p281_p7), %v1095_v4  ;;  %978 = vmatpush3.bf16.msra.mxu1 (!%p281_p7), %v1054_v23 }
  0x26   : > { %983 = vmatprep.subr.bf16.mxu1 (!%p281_p7), %v1095_v4 }
  0x27   : > { %s1298_s18 = smov (!%p329_p8, %s923_s18), 1 }
  0x28   : > { %s938_s15 = sshll.u32 %s1298_s18, 2  ;;  %s335_s28 = scalar_lea.vmem %s1291_s3, %s1298_s18 }
  0x29   : > { %s332_s23 = scalar_lea.vmem %s1288_s0, %s938_s15  ;;  %v341_v10 = vld [vmem:[%s335_s28] sm:$0x1]  ;;  %s339_s9 = scalar_lea.vmem %s1292_s4, %s938_s15 }
  0x2a   : > { %v342_v7 = vld [vmem:[%s332_s23] sm:$0xf]  ;;  %vm400_vm2 = vcmp.gt.f32.partialorder %v341_v10, 0.0 }
  0x2b   : > { %974 = vmatmul.mubr.msk.bf16.vlgmr.msra.gmra.mrb[0].mxu0 %vm352_vm1, %v342_v7  ;;  %v944_v8 = vcombine.low %v342_v7, %v342_v7  ;;  %v401_v14 = vsel %vm400_vm2, 1, %v1100_v13 }
  0x2c   : > { %991 = vmatprep.mubr.msk.bf16.mxu0 %vm1096_vm0, %v1095_v4  ;;  %v1214_v15 = vrot.slane %v401_v14, %v404_v12 }
  0x2d   : > { %473 = vrot.lane.b32.xlu1 %v944_v8, %s1097_s17 }
  0x2e   : > { %vm406_vm3 = vcmp.eq.s32.totalorder %v1214_v15, 1 }
  0x31   : > { %585 = vrot.lane.b32.xlu1 %v1052_v5, %s1098_s24 }
  0x35   : > { %583 = vrot.lane.b32.xlu1 %v944_v8, %s1098_s24 }
  0x39   : > { %695 = vrot.lane.b32.xlu1 %v1052_v5, %s1099_s25 }
  0x3d   : > { %693 = vrot.lane.b32.xlu1 %v944_v8, %s1099_s25 }
  0x9f   : > { %v474_v29 = vpop.permute.xlu1 %473 }
  0xa3   : > { %v586_v32 = vpop.permute.xlu1 %585 }
  0xa4   : > { %v591_v33 = vsel %vm352_vm1, %v586_v32, 0 }
  0xa7   : > { %v584_v34 = vpop.permute.xlu1 %583 }
  0xab   : > { %v696_v35 = vpop.permute.xlu1 %695 }
  0xac   : > { %v701_v36 = vsel %vm352_vm1, %v696_v35, 0 }
  0xaf   : > { %v694_v37 = vpop.permute.xlu1 %693 }
  0xfe   : > { %v393_v16 = vpop.f32.mrb[0].mxu0 }
  0xff   : > { %v399_v17 = vmul.f32 0.35355338, %v393_v16  ;;  %v975_v18 = vpop.f32.mrb[1].mxu0 }
 0x100   : > { %v396_v19 = vpop.f32.mrb[2].mxu0 }
 0x101   : > { %v976_v20 = vpop.f32.mrb[3].mxu0  ;;  %v407_v21 = vsel %vm406_vm3, %v399_v17, -1e+09 }
 0x102   : > { %v409_v22 = vsel %vm408_vm4, %v407_v21, -inf }
 0x103   : > { %410 = vmax.xlane.f32.xlu0 %v409_v22 }
 0x119   : > { %475 = vrot.lane.b32.xlu0 %v1052_v5, %s1097_s17 }
 0x190   : > { %v411_v24 = vpop.xlane.xlu0 %410 }
 0x191   : > { %v412_v25 = vsub.f32 %v407_v21, %v411_v24 }
 0x193   : > { %v413_v26 = vmul.f32 1.442695, %v412_v25 }
 0x194   : > { %v476_v27 = vpop.permute.xlu0 %475 }
 0x195   : > { %1055 = vpow2.f32 %v413_v26  ;;  %v481_v30 = vsel %vm352_vm1, %v476_v27, 0 }
 0x19f   : > { %v1223_v28 = vpop.eup %1055 }
 0x1a0   : > { %v419_v31 = vpack.c.bf16 %v1223_v28, %v1223_v28  ;;  %v415_v21 = vsel %vm408_vm4, %v1223_v28, 0.0 }
 0x1a2   : > { %980 = vmatmul.mubr.msk.bf16.vlgmr.msra.gmra.mrb[0].mxu1 %vm408_vm4, %v419_v31 }
 0x1a3   : > { %984 = vmatpush3.bf16.xpose.msra.mxu1 %v481_v30  ;;  %985 = vmatprep.mubr.msk.bf16.mxu1 %vm1096_vm0, %v1095_v4 }
 0x1a4   : > { %995 = vmatprep.subr.bf16.mxu1 %v1095_v4 }
 0x1aa   : > { %986 = vmatmul.mubr.msk.bf16.vlgmr.msra.gmra.mrb[4].mxu1 %vm352_vm1, %v474_v29 }
 0x1ab   : > { %996 = vmatpush3.bf16.xpose.msra.mxu1 %v591_v33  ;;  %997 = vmatprep.mubr.msk.bf16.mxu1 %vm1096_vm0, %v1095_v4 }
 0x1ac   : > { %1007 = vmatprep.subr.bf16.mxu1 %v1095_v4 }
 0x1b2   : > { %998 = vmatmul.mubr.msk.bf16.vlgmr.msra.gmra.mrb[8].mxu1 %vm352_vm1, %v584_v34 }
 0x1b3   : > { %1008 = vmatpush3.bf16.xpose.msra.mxu1 %v701_v36  ;;  %1009 = vmatprep.mubr.msk.bf16.mxu1 %vm1096_vm0, %v1095_v4 }
 0x1ba   : > { %1010 = vmatmul.mubr.msk.bf16.vlgmr.msra.gmra.mrb[12].mxu1 %vm352_vm1, %v694_v37 }
 0x275   : > { %v1242_v38 = vpop.f32.mrb[0].mxu1 }
 0x276   : > { %v981_v39 = vpop.f32.mrb[1].mxu1 }
 0x277   : > { %v466_v40 = vpop.f32.mrb[2].mxu1 }
 0x278   : > { %v982_v41 = vpop.f32.mrb[3].mxu1 }
 0x27d   : > { %v517_v42 = vpop.f32.mrb[4].mxu1 }
 0x27e   : > { %v523_v43 = vmul.f32 0.35355338, %v517_v42  ;;  %v987_v44 = vpop.f32.mrb[5].mxu1 }
 0x27f   : > { %v520_v45 = vpop.f32.mrb[6].mxu1 }
 0x280   : > { %v988_v46 = vpop.f32.mrb[7].mxu1  ;;  %v524_v47 = vsel %vm406_vm3, %v523_v43, -1e+09 }
 0x281   : > { %v525_v48 = vsel %vm408_vm4, %v524_v47, -inf }
 0x282   : > { %526 = vmax.xlane.f32.xlu1 %v525_v48 }
 0x285   : > { %v627_v49 = vpop.f32.mrb[8].mxu1 }
 0x286   : > { %v633_v50 = vmul.f32 0.35355338, %v627_v49  ;;  %v999_v51 = vpop.f32.mrb[9].mxu1 }
 0x287   : > { %v630_v52 = vpop.f32.mrb[10].mxu1 }
 0x288   : > { %v634_v53 = vsel %vm406_vm3, %v633_v50, -1e+09  ;;  %v1000_v54 = vpop.f32.mrb[11].mxu1 }
 0x289   : > { %v635_v55 = vsel %vm408_vm4, %v634_v53, -inf }
 0x28a   : > { %636 = vmax.xlane.f32.xlu0 %v635_v55 }
 0x28d   : > { %v737_v56 = vpop.f32.mrb[12].mxu1 }
 0x28e   : > { %v1011_v57 = vpop.f32.mrb[13].mxu1  ;;  %v743_v60 = vmul.f32 0.35355338, %v737_v56 }
 0x28f   : > { %v740_v58 = vpop.f32.mrb[14].mxu1 }
 0x290   : > { %v1012_v59 = vpop.f32.mrb[15].mxu1  ;;  %v744_v61 = vsel %vm406_vm3, %v743_v60, -1e+09 }
 0x291   : > { %v745_v62 = vsel %vm408_vm4, %v744_v61, -inf }
 0x293   : > { %646 = vrot.lane.b32.xlu1 %v1054_v23, %s1098_s24 }
 0x2a0   : > { %536 = vrot.lane.b32.xlu0 %v1054_v23, %s1097_s17 }
 0x2b7   : > { %746 = vmax.xlane.f32.xlu1 %v745_v62 }
 0x2c8   : > { %756 = vrot.lane.b32.xlu1 %v1054_v23, %s1099_s25 }
 0x30f   : > { %v527_v63 = vpop.xlane.xlu1 %526 }
 0x310   : > { %v528_v0 = vsub.f32 %v524_v47, %v527_v63 }
 0x312   : > { %v529_v1 = vmul.f32 1.442695, %v528_v0 }
 0x313   : > { %v647_v10 = vpop.permute.xlu1 %646 }
 0x314   : > { %1057 = vpow2.f32 %v529_v1 }
 0x317   : > { %v637_v2 = vpop.xlane.xlu0 %636 }
 0x318   : > { %v638_v3 = vsub.f32 %v634_v53, %v637_v2 }
 0x31a   : > { %v639_v5 = vmul.f32 1.442695, %v638_v3 }
 0x31b   : > { %v537_v6 = vpop.permute.xlu0 %536 }
 0x31c   : > { %1059 = vpow2.f32 %v639_v5  ;;  %990 = vmatpush3.bf16.msra.mxu0 %v537_v6 }
 0x31d   : > { %1001 = vmatprep.subr.bf16.mxu0 %v1095_v4 }
 0x31e   : > { %v1058_v7 = vpop.eup %1057 }
 0x31f   : > { %v531_v8 = vsel %vm408_vm4, %v1058_v7, 0.0  ;;  %v535_v9 = vpack.c.bf16 %v1058_v7, %v1058_v7 }
 0x320   : > { %532 = vadd.xlane.f32.xlu0 %v531_v8 }
 0x321   : > { %992 = vmatmul.mubr.msk.bf16.vlgmr.msra.gmra.mrb[4].mxu0 %vm408_vm4, %v535_v9 }
 0x322   : > { %1002 = vmatpush3.bf16.msra.mxu0 %v647_v10  ;;  %1003 = vmatprep.mubr.msk.bf16.mxu0 %vm1096_vm0, %v1095_v4 }
 0x323   : > { %1013 = vmatprep.subr.bf16.mxu0 %v1095_v4 }
 0x326   : > { %v1060_v11 = vpop.eup %1059 }
 0x327   : > { %v641_v12 = vsel %vm408_vm4, %v1060_v11, 0.0  ;;  %v645_v13 = vpack.c.bf16 %v1060_v11, %v1060_v11 }
 0x328   : > { %642 = vadd.xlane.f32.xlu1 %v641_v12 }
 0x329   : > { %1004 = vmatmul.mubr.msk.bf16.vlgmr.msra.gmra.mrb[8].mxu0 %vm408_vm4, %v645_v13 }
 0x32a   : > { %1015 = vmatprep.mubr.msk.bf16.mxu0 %vm1096_vm0, %v1095_v4 }
 0x344   : > { %v747_v14 = vpop.xlane.xlu1 %746 }
 0x345   : > { %v748_v15 = vsub.f32 %v744_v61, %v747_v14 }
 0x347   : > { %v749_v16 = vmul.f32 1.442695, %v748_v15 }
 0x348   : > { %v757_v17 = vpop.permute.xlu1 %756 }
 0x349   : > { %1061 = vpow2.f32 %v749_v16  ;;  %1014 = vmatpush3.bf16.msra.mxu0 %v757_v17 }
 0x353   : > { %v1062_v18 = vpop.eup %1061 }
 0x354   : > { %v751_v19 = vsel %vm408_vm4, %v1062_v18, 0.0  ;;  %v755_v20 = vpack.c.bf16 %v1062_v18, %v1062_v18 }
 0x355   : > { %752 = vadd.xlane.f32.xlu0 %v751_v19 }
 0x356   : > { %1016 = vmatmul.mubr.msk.bf16.vlgmr.msra.gmra.mrb[12].mxu0 %vm408_vm4, %v755_v20 }
 0x359   : > { %416 = vadd.xlane.f32.xlu0 %v415_v21 }
 0x3ad   : > { %v533_v22 = vpop.xlane.xlu0 %532 }
 0x3ae   : > { %1063 = vrcp.f32 %v533_v22 }
 0x3b5   : > { %v643_v4 = vpop.xlane.xlu1 %642 }
 0x3b6   : > { %1065 = vrcp.f32 %v643_v4 }
 0x3b8   : > { %v1064_v23 = vpop.eup %1063 }
 0x3c0   : > { %v1066_v30 = vpop.eup %1065 }
 0x3e2   : > { %v753_v35 = vpop.xlane.xlu0 %752 }
 0x3e3   : > { %1067 = vrcp.f32 %v753_v35 }
 0x3e6   : > { %v417_v43 = vpop.xlane.xlu0 %416 }
 0x3e7   : > { %1069 = vrcp.f32 %v417_v43 }
 0x3ed   : > { %v1068_v36 = vpop.eup %1067 }
 0x3f1   : > { %v1070_v44 = vpop.eup %1069 }
 0x3f2   : > { %v469_v46 = vmul.f32 %v1070_v44, %v1242_v38 }
 0x3f4   : > { %v576_v24 = vpop.f32.mrb[4].mxu0 }
 0x3f5   : > { %v582_v25 = vmul.f32 %v1064_v23, %v576_v24  ;;  %v993_v26 = vpop.f32.mrb[5].mxu0 }
 0x3f6   : > { %v579_v27 = vpop.f32.mrb[6].mxu0 }
 0x3f7   : > { %804 = vrot.lane.b32.xlu1 %v582_v25, %s1101_s30  ;;  %v994_v29 = vpop.f32.mrb[7].mxu0 }
 0x3fc   : > { %v686_v31 = vpop.f32.mrb[8].mxu0 }
 0x3fd   : > { %v692_v32 = vmul.f32 %v1066_v30, %v686_v31  ;;  %v1005_v33 = vpop.f32.mrb[9].mxu0 }
 0x3fe   : > { %v689_v34 = vpop.f32.mrb[10].mxu0 }
 0x3ff   : > { %808 = vrot.lane.b32.xlu0 %v692_v32, %s1102_s5  ;;  %v1006_v28 = vpop.f32.mrb[11].mxu0 }
 0x429   : > { %v796_v37 = vpop.f32.mrb[12].mxu0 }
 0x42a   : > { %v802_v39 = vmul.f32 %v1068_v36, %v796_v37  ;;  %v1017_v40 = vpop.f32.mrb[13].mxu0 }
 0x42b   : > { %v799_v41 = vpop.f32.mrb[14].mxu0 }
 0x42c   : > { %812 = vrot.lane.b32.xlu1 %v802_v39, %s1103_s6  ;;  %v1018_v42 = vpop.f32.mrb[15].mxu0 }
 0x469   : > { %v805_v45 = vpop.permute.xlu1 %804 }
 0x46a   : > { %v815_v48 = vsel %vm352_vm1, %v469_v46, %v805_v45 }
 0x471   : > { %v809_v47 = vpop.permute.xlu0 %808 }
 0x472   : > { %v816_v49 = vsel %vm408_vm4, %v815_v48, %v809_v47 }
 0x49e   : > { %v813_v50 = vpop.permute.xlu1 %812 }
 0x49f   : > { %v818_v51 = vsel %vm817_vm5, %v816_v49, %v813_v50 }
 0x4a0   : > { %v820_v52 = vsel %vm819_vm6, %v818_v51, 0.0 }
 0x4a1   : > { %v821_v53 = vpack.c.bf16 %v820_v52, %v820_v52 }
 0x4a3   : > { %822 = vst [vmem:[%s339_s9] sm:$0xf] %v821_v53 }
 0x4a4 PF: > { %p11_p9 = scmp.ge.s32.totalorder %s1146_s19, 4   ;;  %s1294_s15 = smov %s1089_s16 }
 0x4a5   : > { %s1295_s16 = smov %s1155_s22  ;;  %s1296_s17 = smov %s1146_s19 }
 0x4a6   :  { %13 = sbr.rel (!%p11_p9) target bundleno = 2 (0x2), region = 167 }

</bundles_post_ra>
